<compile_context>
chip_gen: v5e
topology: v5e:2x2
jax: 0.10.0
libtpu: 0.0.40
codegen_flags: <defaults>
</compile_context>

<pallas_src>
import functools
import math

import jax
import jax.numpy as jnp
from jax.experimental import pallas as pl
from jax.experimental.pallas import tpu as pltpu

LN_EPS = 1e-5            # F.layer_norm default eps
_SMALL_SEQ_MAX = 32      # sequences this short use the batch-on-lanes kernel


# ----------------------------------------------------------------------------
# hardware-aware sizing helpers
# ----------------------------------------------------------------------------
def _vmem_limit_bytes():
    """Scoped-VMEM limit derived from the actual chip (v7x: 64 MiB/TC,
    v5e/v6e: 128 MiB).  Conservative 64 MiB fallback if the query fails."""
    cap = 64 * 1024 * 1024
    try:
        info = pltpu.get_tpu_info()
        cap = int(getattr(info, "vmem_capacity_bytes", cap) or cap)
    except Exception:
        pass
    return min(cap * 3 // 4, 100 * 1024 * 1024)


def _small_per_lane_bytes(seq):
    """Per-lane (per batch element) VMEM bytes of one small-seq grid step,
    including 2x double-buffering of the input and output blocks."""
    tile = seq * 8 * 4            # (seq, emb) slab, emb padded to 8 sublanes, f32
    return 2 * tile + 2 * tile + 8 * tile       # 2x in + 2x out + temporaries


def _flash_per_item_bytes(tq, tkv):
    """Per-batch-item VMEM bytes of one flash grid step (double-buffered
    blocks, scratch, and score-sized temporaries all counted)."""
    q_like = tq * 128 * 4         # (tq, emb) padded to 128 lanes, f32
    kv = 8 * tkv * 4              # (emb, tkv) padded to 8 sublanes, f32
    score = tq * tkv * 4
    return 2 * (3 * q_like + kv) + 3 * q_like + 4 * score


def _pick_lane_block(n, per_lane_bytes, budget, min_steps=4):
    """Lane-axis block: divisor of n, multiple of 128, fits the budget and
    (preferably) leaves >= min_steps grid steps for pipelining / megacore."""
    ok = [d for d in range(128, n + 1, 128)
          if n % d == 0 and d * per_lane_bytes <= budget]
    if ok:
        stepped = [d for d in ok if n // d >= min_steps]
        return max(stepped) if stepped else min(ok)
    return n                      # n < 128 (or awkward): single full block


def _pick_seq_tile(seq, cap):
    """Largest divisor of seq that is a multiple of 128 and <= cap, else the
    full sequence (a full-extent block is always legal)."""
    best = None
    for d in range(128, min(cap, seq) + 1, 128):
        if seq % d == 0:
            best = d
    return best if best is not None else seq


def _pick_batch_block(n, per_item_bytes, budget, other_parallel_steps):
    """Batch block: divisor of n fitting the VMEM budget, capped so the
    parallel part of the grid has ~4+ steps (DMA overlap + 2 TensorCores)."""
    cap = max(1, min(n, budget // max(per_item_bytes, 1)))
    want = max(1, (4 + other_parallel_steps - 1) // other_parallel_steps)
    if n >= want:
        cap = min(cap, max(1, n // want))
    for d in range(cap, 0, -1):
        if n % d == 0:
            return d
    return 1


# ----------------------------------------------------------------------------
# numerics helper
# ----------------------------------------------------------------------------
def _layer_norm_f32(x, axis=-1):
    """F.layer_norm (no affine, biased variance) over `axis`, in f32."""
    mean = jnp.mean(x, axis=axis, keepdims=True)
    cen = x - mean
    var = jnp.mean(cen * cen, axis=axis, keepdims=True)
    return cen * jax.lax.rsqrt(var + LN_EPS)


# ----------------------------------------------------------------------------
# kernels
# ----------------------------------------------------------------------------
def _attn_small_seq_kernel(x_ref, o_ref, *, scale):
    """Small-seq attention vectorized across the lane (batch) axis.

    Block layout: (seq, emb, BN) — the independent attention instances sit on
    the 128-wide lane axis, so LN / scores / softmax / PV are unmasked
    VPU/XLU/EUP work.  The tiny seq and emb axes are unrolled in Python; the
    MXU is intentionally unused (a (seq x emb)@(emb x seq) matmul would run
    at <1% utilization).
    """
    x = x_ref[...].astype(jnp.float32)                       # (seq, emb, BN)
    xn = _layer_norm_f32(x, axis=1)                          # LN over emb

    seq = x_ref.shape[0]
    for i in range(seq):                                     # unrolled: seq small
        q_i = xn[i] * scale                                  # (emb, BN); scale folded into Q
        s_i = jnp.sum(q_i[None] * xn, axis=1, keepdims=True)  # (seq, 1, BN)
        m = jnp.max(s_i, axis=0, keepdims=True)              # (1, 1, BN)
        e = jnp.exp(s_i - m)
        inv = pl.reciprocal(jnp.sum(e, axis=0, keepdims=True), approx=True)
        p_i = e * inv                                        # (seq, 1, BN)
        out_i = jnp.sum(p_i * xn, axis=0)                    # (emb, BN)
        o_ref[i] = (out_i + x[i]).astype(o_ref.dtype)


def _attn_flash_kernel(xq_ref, xres_ref, xkv_ref, o_ref,
                       m_ref, l_ref, acc_ref, *, scale):
    """Online-softmax attention over KV tiles.

    Q / residual / output blocks are (bn, tq, emb) (emb tiny), the KV block is
    (bn, emb, tkv) so the repeatedly-streamed operand and the (tq, tkv) score
    tile are lane-dense.  LayerNorm was applied once on the host, so this is
    pure matmul + online softmax + residual.
    """
    ki = pl.program_id(2)

    @pl.when(ki == 0)
    def _init():
        m_ref[...] = jnp.full(m_ref.shape, -jnp.inf, jnp.float32)
        l_ref[...] = jnp.zeros(l_ref.shape, jnp.float32)
        acc_ref[...] = jnp.zeros(acc_ref.shape, jnp.float32)

    q = (xq_ref[...] * scale).astype(jnp.bfloat16)           # (bn, tq, emb)
    kn = xkv_ref[...].astype(jnp.bfloat16)                   # (bn, emb, tkv)

    s = jnp.einsum("bqd,bdk->bqk", q, kn,
                   preferred_element_type=jnp.float32)       # (bn, tq, tkv)

    m_prev = m_ref[...]
    m_new = jnp.maximum(m_prev, jnp.max(s, axis=-1, keepdims=True))
    alpha = jnp.exp(m_prev - m_new)
    p = jnp.exp(s - m_new)
    l_ref[...] = alpha * l_ref[...] + jnp.sum(p, axis=-1, keepdims=True)
    acc_ref[...] = alpha * acc_ref[...] + jnp.einsum(
        "bqk,bdk->bqd", p.astype(jnp.bfloat16), kn,
        preferred_element_type=jnp.float32)
    m_ref[...] = m_new

    @pl.when(ki == pl.num_programs(2) - 1)
    def _finalize():
        inv_l = pl.reciprocal(l_ref[...], approx=True)
        o_ref[...] = (acc_ref[...] * inv_l + xres_ref[...]).astype(o_ref.dtype)


# ----------------------------------------------------------------------------
# pallas_call wrappers
# ----------------------------------------------------------------------------
def _attention_small_seq(xr):
    """xr: (seq, emb, N) -> LN + self-attention + residual, same shape."""
    seq, emb, n = xr.shape
    scale = 1.0 / math.sqrt(emb)
    limit = _vmem_limit_bytes()
    budget = limit // 4
    bn = _pick_lane_block(n, _small_per_lane_bytes(seq), budget, min_steps=4)

    kernel = functools.partial(_attn_small_seq_kernel, scale=scale)
    return pl.pallas_call(
        kernel,
        out_shape=jax.ShapeDtypeStruct((seq, emb, n), xr.dtype),
        grid=(n // bn,),
        in_specs=[pl.BlockSpec((seq, emb, bn), lambda i: (0, 0, i))],
        out_specs=pl.BlockSpec((seq, emb, bn), lambda i: (0, 0, i)),
        compiler_params=pltpu.CompilerParams(
            dimension_semantics=("parallel",),
            vmem_limit_bytes=limit),
    )(xr)


def _attention_flash(xr):
    """xr: (N, seq, emb) -> LN + self-attention + residual, same shape."""
    n, seq, emb = xr.shape
    scale = 1.0 / math.sqrt(emb)

    xf = xr.astype(jnp.float32)
    xn = _layer_norm_f32(xf)                 # host LN, once (review suggestion)
    xn_kv = jnp.swapaxes(xn, 1, 2)           # (N, emb, seq): lane-dense KV tiles

    limit = _vmem_limit_bytes()
    budget = limit // 4
    tkv_cap = 256 if limit <= 48 * 1024 * 1024 else 512   # smaller live scores on v7x
    tkv = _pick_seq_tile(seq, tkv_cap)       # multiple of 128 (or full seq)
    tq = _pick_seq_tile(seq, 512)
    q_steps = seq // tq
    bn = _pick_batch_block(n, _flash_per_item_bytes(tq, tkv), budget, q_steps)

    kernel = functools.partial(_attn_flash_kernel, scale=scale)
    return pl.pallas_call(
        kernel,
        out_shape=jax.ShapeDtypeStruct((n, seq, emb), xr.dtype),
        grid=(n // bn, seq // tq, seq // tkv),
        in_specs=[
            pl.BlockSpec((bn, tq, emb), lambda i, q, k: (i, q, 0)),   # xn  (Q)
            pl.BlockSpec((bn, tq, emb), lambda i, q, k: (i, q, 0)),   # x   (residual)
            pl.BlockSpec((bn, emb, tkv), lambda i, q, k: (i, 0, k)),  # xn  (KV, lane-dense)
        ],
        out_specs=pl.BlockSpec((bn, tq, emb), lambda i, q, k: (i, q, 0)),
        scratch_shapes=[
            pltpu.VMEM((bn, tq, 1), jnp.float32),    # running max
            pltpu.VMEM((bn, tq, 1), jnp.float32),    # running sum
            pltpu.VMEM((bn, tq, emb), jnp.float32),  # output accumulator
        ],
        compiler_params=pltpu.CompilerParams(
            dimension_semantics=("parallel", "parallel", "arbitrary"),
            vmem_limit_bytes=limit),
    )(xn, xf, xn_kv)


# ----------------------------------------------------------------------------
# einops glue (plain JAX reshape/transpose) + module forward
# ----------------------------------------------------------------------------
def _layout_key(einops_to):
    return " ".join(einops_to.split())


def _to_math_layout(x, n_segment, key):
    """rearrange '(b t) c h w' -> (N, seq, emb); returns (xr, inverse_fn)."""
    bt, c, h, w = x.shape
    t = n_segment
    b = bt // t

    if key == "(b h w) t c":
        xr = (x.reshape(b, t, c, h, w).transpose(0, 3, 4, 1, 2)
              .reshape(b * h * w, t, c))

        def inv(y):
            return (y.reshape(b, h, w, t, c).transpose(0, 3, 4, 1, 2)
                    .reshape(bt, c, h, w))
        return xr, inv

    if key == "(b t) (h w) c":
        xr = x.transpose(0, 2, 3, 1).reshape(bt, h * w, c)

        def inv(y):
            return y.reshape(bt, h, w, c).transpose(0, 3, 1, 2)
        return xr, inv

    if key == "b (t h w) c":
        xr = (x.reshape(b, t, c, h, w).transpose(0, 1, 3, 4, 2)
              .reshape(b, t * h * w, c))

        def inv(y):
            return (y.reshape(b, t, h, w, c).transpose(0, 1, 4, 2, 3)
                    .reshape(bt, c, h, w))
        return xr, inv

    # TODO(synk): other einops_to layouts are pure reshape/transpose glue;
    # only the three layouts used by the model are wired up here.
    raise NotImplementedError(f"unsupported einops_to: {key!r}")


def _to_seq_minor_layout(x, n_segment, key):
    """rearrange '(b t) c h w' -> (seq, emb, N): the independent attention
    instances sit on the minor (lane) axis for the small-seq kernel."""
    bt, c, h, w = x.shape
    t = n_segment
    b = bt // t

    if key == "(b h w) t c":
        xr = (x.reshape(b, t, c, h, w).transpose(1, 2, 0, 3, 4)
              .reshape(t, c, b * h * w))

        def inv(y):
            return (y.reshape(t, c, b, h, w).transpose(2, 0, 1, 3, 4)
                    .reshape(bt, c, h, w))
        return xr, inv

    if key == "(b t) (h w) c":
        xr = x.transpose(2, 3, 1, 0).reshape(h * w, c, bt)

        def inv(y):
            return y.reshape(h, w, c, bt).transpose(3, 2, 0, 1)
        return xr, inv

    if key == "b (t h w) c":
        xr = (x.reshape(b, t, c, h, w).transpose(1, 3, 4, 2, 0)
              .reshape(t * h * w, c, b))

        def inv(y):
            return (y.reshape(t, h, w, c, b).transpose(4, 0, 3, 1, 2)
                    .reshape(bt, c, h, w))
        return xr, inv

    raise NotImplementedError(f"unsupported einops_to: {key!r}")


def attention_forward(x, n_segment, einops_to):
    """Forward pass of the Attention module.  x: (b*t, c, h, w)."""
    key = _layout_key(einops_to)
    bt, c, h, w = x.shape

    if key == "(b h w) t c":
        seq = n_segment
    elif key == "(b t) (h w) c":
        seq = h * w
    elif key == "b (t h w) c":
        seq = n_segment * h * w
    else:
        raise NotImplementedError(f"unsupported einops_to: {einops_to!r}")

    if seq <= _SMALL_SEQ_MAX:
        xr, inv = _to_seq_minor_layout(x, n_segment, key)   # (seq, emb, N)
        return inv(_attention_small_seq(xr))

    xr, inv = _to_math_layout(x, n_segment, key)            # (N, seq, emb)
    return inv(_attention_flash(xr))


def _attention_reference(x, n_segment, einops_to):
    """Pure-JAX reference (mirrors the PyTorch module, f32, exact softmax)."""
    xr, inv = _to_math_layout(x, n_segment, _layout_key(einops_to))
    xr = xr.astype(jnp.float32)
    xn = _layer_norm_f32(xr)
    s = jnp.einsum("bqd,bkd->bqk", xn, xn) / math.sqrt(xr.shape[-1])
    p = jax.nn.softmax(s, axis=-1)
    y = jnp.einsum("bqk,bkd->bqd", p, xn) + xr
    return inv(y)


if __name__ == "__main__":
    # shapes consistent with the module: batch=2, n_segment=8, channels=4,
    # spatial 16x16  ->  x: (16, 4, 16, 16)
    b, t, c, h, w = 2, 8, 4, 16, 16
    key = jax.random.PRNGKey(0)
    x = jax.random.normal(key, (b * t, c, h, w), dtype=jnp.float32)

    # 1) temporal attention: seq=8, N=512 -> batch-on-lanes kernel
    out = attention_forward(x, n_segment=t, einops_to="(b h w) t c")
    out = jax.block_until_ready(out)
    assert out.shape == (b * t, c, h, w) and out.dtype == jnp.float32
    ref = _attention_reference(x, n_segment=t, einops_to="(b h w) t c")
    err = float(jnp.max(jnp.abs(out - ref)))
    assert err < 1e-1, err

    # 2) joint space-time attention: seq=2048, N=2 -> KV-tiled flash kernel
    out2 = attention_forward(x, n_segment=t, einops_to="b (t h w) c")
    out2 = jax.block_until_ready(out2)
    assert out2.shape == (b * t, c, h, w)
    ref2 = _attention_reference(x, n_segment=t, einops_to="b (t h w) c")
    err2 = float(jnp.max(jnp.abs(out2 - ref2)))
    assert err2 < 1e-1, err2

    # 3) per-frame spatial attention: seq=256, N=16 -> flash path, 1 KV tile
    out3 = attention_forward(x, n_segment=t, einops_to="(b t) (h w) c")
    out3 = jax.block_until_ready(out3)
    assert out3.shape == (b * t, c, h, w)
    ref3 = _attention_reference(x, n_segment=t, einops_to="(b t) (h w) c")
    err3 = float(jnp.max(jnp.abs(out3 - ref3)))
    assert err3 < 1e-1, err3

    print("KERNEL_OK")
</pallas_src>

<mosaic_0001>
module attributes {stable_mosaic.version = 11 : i64} {
  func.func @_attn_small_seq_kernel(%arg0: i32, %arg1: memref<8x4x128xf32, #tpu.memory_space<vmem>>, %arg2: memref<8x4x128xf32, #tpu.memory_space<vmem>>) attributes {dimension_semantics = [#tpu.dimension_semantics<parallel>], iteration_bounds = array<i64: 4>, scalar_prefetch = 0 : i64, scratch_operands = 0 : i64, tpu.core_type = #tpu.core_type<tc>, window_params = [{transform_indices = @transform_0, window_bounds = array<i64: 8, 4, 128>}, {transform_indices = @transform_1, window_bounds = array<i64: 8, 4, 128>}]} {
    %c0 = arith.constant 0 : index
    %c0_0 = arith.constant 0 : index
    %c0_1 = arith.constant 0 : index
    %0 = vector.load %arg1[%c0, %c0_0, %c0_1] : memref<8x4x128xf32, #tpu.memory_space<vmem>>, vector<8x4x128xf32>
    %cst = arith.constant dense<0.000000e+00> : vector<8x128xf32>
    %1 = vector.multi_reduction <add>, %0, %cst [1] : vector<8x4x128xf32> to vector<8x128xf32>
    %2 = vector.shape_cast %1 : vector<8x128xf32> to vector<8x1x128xf32>
    %cst_2 = arith.constant 4.000000e+00 : f32
    %3 = vector.broadcast %cst_2 : f32 to vector<8x1x128xf32>
    %4 = arith.divf %2, %3 : vector<8x1x128xf32>
    %5 = vector.broadcast %4 : vector<8x1x128xf32> to vector<8x4x128xf32>
    %6 = arith.subf %0, %5 : vector<8x4x128xf32>
    %7 = arith.mulf %6, %6 : vector<8x4x128xf32>
    %cst_3 = arith.constant dense<0.000000e+00> : vector<8x128xf32>
    %8 = vector.multi_reduction <add>, %7, %cst_3 [1] : vector<8x4x128xf32> to vector<8x128xf32>
    %9 = vector.shape_cast %8 : vector<8x128xf32> to vector<8x1x128xf32>
    %cst_4 = arith.constant 4.000000e+00 : f32
    %10 = vector.broadcast %cst_4 : f32 to vector<8x1x128xf32>
    %11 = arith.divf %9, %10 : vector<8x1x128xf32>
    %cst_5 = arith.constant 9.99999974E-6 : f32
    %12 = vector.broadcast %cst_5 : f32 to vector<8x1x128xf32>
    %13 = arith.addf %11, %12 : vector<8x1x128xf32>
    %14 = math.rsqrt %13 : vector<8x1x128xf32>
    %15 = vector.broadcast %14 : vector<8x1x128xf32> to vector<8x4x128xf32>
    %16 = arith.mulf %6, %15 : vector<8x4x128xf32>
    %17 = vector.extract_strided_slice %16 {offsets = [0, 0, 0], sizes = [1, 4, 128], strides = [1, 1, 1]} : vector<8x4x128xf32> to vector<1x4x128xf32>
    %18 = vector.shape_cast %17 : vector<1x4x128xf32> to vector<4x128xf32>
    %cst_6 = arith.constant 5.000000e-01 : f32
    %19 = vector.broadcast %cst_6 : f32 to vector<4x128xf32>
    %20 = arith.mulf %18, %19 : vector<4x128xf32>
    %21 = vector.shape_cast %20 : vector<4x128xf32> to vector<1x4x128xf32>
    %22 = vector.broadcast %21 : vector<1x4x128xf32> to vector<8x4x128xf32>
    %23 = arith.mulf %22, %16 : vector<8x4x128xf32>
    %cst_7 = arith.constant dense<0.000000e+00> : vector<8x128xf32>
    %24 = vector.multi_reduction <add>, %23, %cst_7 [1] : vector<8x4x128xf32> to vector<8x128xf32>
    %25 = vector.shape_cast %24 : vector<8x128xf32> to vector<8x1x128xf32>
    %cst_8 = arith.constant dense<0xFF800000> : vector<1x128xf32>
    %26 = vector.multi_reduction <maximumf>, %25, %cst_8 [0] : vector<8x1x128xf32> to vector<1x128xf32>
    %27 = vector.shape_cast %26 : vector<1x128xf32> to vector<1x1x128xf32>
    %28 = vector.broadcast %27 : vector<1x1x128xf32> to vector<8x1x128xf32>
    %29 = arith.subf %25, %28 : vector<8x1x128xf32>
    %30 = math.exp %29 : vector<8x1x128xf32>
    %cst_9 = arith.constant dense<0.000000e+00> : vector<1x128xf32>
    %31 = vector.multi_reduction <add>, %30, %cst_9 [0] : vector<8x1x128xf32> to vector<1x128xf32>
    %32 = vector.shape_cast %31 : vector<1x128xf32> to vector<1x1x128xf32>
    %33 = tpu.reciprocal %32 {approx = true} : vector<1x1x128xf32> -> vector<1x1x128xf32>
    %34 = vector.broadcast %33 : vector<1x1x128xf32> to vector<8x1x128xf32>
    %35 = arith.mulf %30, %34 : vector<8x1x128xf32>
    %36 = vector.broadcast %35 : vector<8x1x128xf32> to vector<8x4x128xf32>
    %37 = arith.mulf %36, %16 : vector<8x4x128xf32>
    %cst_10 = arith.constant dense<0.000000e+00> : vector<4x128xf32>
    %38 = vector.multi_reduction <add>, %37, %cst_10 [0] : vector<8x4x128xf32> to vector<4x128xf32>
    %39 = vector.extract_strided_slice %0 {offsets = [0, 0, 0], sizes = [1, 4, 128], strides = [1, 1, 1]} : vector<8x4x128xf32> to vector<1x4x128xf32>
    %40 = vector.shape_cast %39 : vector<1x4x128xf32> to vector<4x128xf32>
    %41 = arith.addf %38, %40 : vector<4x128xf32>
    %c0_11 = arith.constant 0 : index
    %c0_12 = arith.constant 0 : index
    %c0_13 = arith.constant 0 : index
    %42 = vector.load %arg2[%c0_11, %c0_12, %c0_13] : memref<8x4x128xf32, #tpu.memory_space<vmem>>, vector<1x4x128xf32>
    %43 = vector.shape_cast %42 : vector<1x4x128xf32> to vector<4x128xf32>
    %44 = vector.shape_cast %41 : vector<4x128xf32> to vector<1x4x128xf32>
    tpu.vector_store %arg2[%c0_11, %c0_12, %c0_13], %44 {strides = array<i32>} : memref<8x4x128xf32, #tpu.memory_space<vmem>>, vector<1x4x128xf32>,
    %45 = vector.extract_strided_slice %16 {offsets = [1, 0, 0], sizes = [1, 4, 128], strides = [1, 1, 1]} : vector<8x4x128xf32> to vector<1x4x128xf32>
    %46 = vector.shape_cast %45 : vector<1x4x128xf32> to vector<4x128xf32>
    %cst_14 = arith.constant 5.000000e-01 : f32
    %47 = vector.broadcast %cst_14 : f32 to vector<4x128xf32>
    %48 = arith.mulf %46, %47 : vector<4x128xf32>
    %49 = vector.shape_cast %48 : vector<4x128xf32> to vector<1x4x128xf32>
    %50 = vector.broadcast %49 : vector<1x4x128xf32> to vector<8x4x128xf32>
    %51 = arith.mulf %50, %16 : vector<8x4x128xf32>
    %cst_15 = arith.constant dense<0.000000e+00> : vector<8x128xf32>
    %52 = vector.multi_reduction <add>, %51, %cst_15 [1] : vector<8x4x128xf32> to vector<8x128xf32>
    %53 = vector.shape_cast %52 : vector<8x128xf32> to vector<8x1x128xf32>
    %cst_16 = arith.constant dense<0xFF800000> : vector<1x128xf32>
    %54 = vector.multi_reduction <maximumf>, %53, %cst_16 [0] : vector<8x1x128xf32> to vector<1x128xf32>
    %55 = vector.shape_cast %54 : vector<1x128xf32> to vector<1x1x128xf32>
    %56 = vector.broadcast %55 : vector<1x1x128xf32> to vector<8x1x128xf32>
    %57 = arith.subf %53, %56 : vector<8x1x128xf32>
    %58 = math.exp %57 : vector<8x1x128xf32>
    %cst_17 = arith.constant dense<0.000000e+00> : vector<1x128xf32>
    %59 = vector.multi_reduction <add>, %58, %cst_17 [0] : vector<8x1x128xf32> to vector<1x128xf32>
    %60 = vector.shape_cast %59 : vector<1x128xf32> to vector<1x1x128xf32>
    %61 = tpu.reciprocal %60 {approx = true} : vector<1x1x128xf32> -> vector<1x1x128xf32>
    %62 = vector.broadcast %61 : vector<1x1x128xf32> to vector<8x1x128xf32>
    %63 = arith.mulf %58, %62 : vector<8x1x128xf32>
    %64 = vector.broadcast %63 : vector<8x1x128xf32> to vector<8x4x128xf32>
    %65 = arith.mulf %64, %16 : vector<8x4x128xf32>
    %cst_18 = arith.constant dense<0.000000e+00> : vector<4x128xf32>
    %66 = vector.multi_reduction <add>, %65, %cst_18 [0] : vector<8x4x128xf32> to vector<4x128xf32>
    %67 = vector.extract_strided_slice %0 {offsets = [1, 0, 0], sizes = [1, 4, 128], strides = [1, 1, 1]} : vector<8x4x128xf32> to vector<1x4x128xf32>
    %68 = vector.shape_cast %67 : vector<1x4x128xf32> to vector<4x128xf32>
    %69 = arith.addf %66, %68 : vector<4x128xf32>
    %c1 = arith.constant 1 : index
    %c0_19 = arith.constant 0 : index
    %c0_20 = arith.constant 0 : index
    %70 = vector.load %arg2[%c1, %c0_19, %c0_20] : memref<8x4x128xf32, #tpu.memory_space<vmem>>, vector<1x4x128xf32>
    %71 = vector.shape_cast %70 : vector<1x4x128xf32> to vector<4x128xf32>
    %72 = vector.shape_cast %69 : vector<4x128xf32> to vector<1x4x128xf32>
    tpu.vector_store %arg2[%c1, %c0_19, %c0_20], %72 {strides = array<i32>} : memref<8x4x128xf32, #tpu.memory_space<vmem>>, vector<1x4x128xf32>,
    %73 = vector.extract_strided_slice %16 {offsets = [2, 0, 0], sizes = [1, 4, 128], strides = [1, 1, 1]} : vector<8x4x128xf32> to vector<1x4x128xf32>
    %74 = vector.shape_cast %73 : vector<1x4x128xf32> to vector<4x128xf32>
    %cst_21 = arith.constant 5.000000e-01 : f32
    %75 = vector.broadcast %cst_21 : f32 to vector<4x128xf32>
    %76 = arith.mulf %74, %75 : vector<4x128xf32>
    %77 = vector.shape_cast %76 : vector<4x128xf32> to vector<1x4x128xf32>
    %78 = vector.broadcast %77 : vector<1x4x128xf32> to vector<8x4x128xf32>
    %79 = arith.mulf %78, %16 : vector<8x4x128xf32>
    %cst_22 = arith.constant dense<0.000000e+00> : vector<8x128xf32>
    %80 = vector.multi_reduction <add>, %79, %cst_22 [1] : vector<8x4x128xf32> to vector<8x128xf32>
    %81 = vector.shape_cast %80 : vector<8x128xf32> to vector<8x1x128xf32>
    %cst_23 = arith.constant dense<0xFF800000> : vector<1x128xf32>
    %82 = vector.multi_reduction <maximumf>, %81, %cst_23 [0] : vector<8x1x128xf32> to vector<1x128xf32>
    %83 = vector.shape_cast %82 : vector<1x128xf32> to vector<1x1x128xf32>
    %84 = vector.broadcast %83 : vector<1x1x128xf32> to vector<8x1x128xf32>
    %85 = arith.subf %81, %84 : vector<8x1x128xf32>
    %86 = math.exp %85 : vector<8x1x128xf32>
    %cst_24 = arith.constant dense<0.000000e+00> : vector<1x128xf32>
    %87 = vector.multi_reduction <add>, %86, %cst_24 [0] : vector<8x1x128xf32> to vector<1x128xf32>
    %88 = vector.shape_cast %87 : vector<1x128xf32> to vector<1x1x128xf32>
    %89 = tpu.reciprocal %88 {approx = true} : vector<1x1x128xf32> -> vector<1x1x128xf32>
    %90 = vector.broadcast %89 : vector<1x1x128xf32> to vector<8x1x128xf32>
    %91 = arith.mulf %86, %90 : vector<8x1x128xf32>
    %92 = vector.broadcast %91 : vector<8x1x128xf32> to vector<8x4x128xf32>
    %93 = arith.mulf %92, %16 : vector<8x4x128xf32>
    %cst_25 = arith.constant dense<0.000000e+00> : vector<4x128xf32>
    %94 = vector.multi_reduction <add>, %93, %cst_25 [0] : vector<8x4x128xf32> to vector<4x128xf32>
    %95 = vector.extract_strided_slice %0 {offsets = [2, 0, 0], sizes = [1, 4, 128], strides = [1, 1, 1]} : vector<8x4x128xf32> to vector<1x4x128xf32>
    %96 = vector.shape_cast %95 : vector<1x4x128xf32> to vector<4x128xf32>
    %97 = arith.addf %94, %96 : vector<4x128xf32>
    %c2 = arith.constant 2 : index
    %c0_26 = arith.constant 0 : index
    %c0_27 = arith.constant 0 : index
    %98 = vector.load %arg2[%c2, %c0_26, %c0_27] : memref<8x4x128xf32, #tpu.memory_space<vmem>>, vector<1x4x128xf32>
    %99 = vector.shape_cast %98 : vector<1x4x128xf32> to vector<4x128xf32>
    %100 = vector.shape_cast %97 : vector<4x128xf32> to vector<1x4x128xf32>
    tpu.vector_store %arg2[%c2, %c0_26, %c0_27], %100 {strides = array<i32>} : memref<8x4x128xf32, #tpu.memory_space<vmem>>, vector<1x4x128xf32>,
    %101 = vector.extract_strided_slice %16 {offsets = [3, 0, 0], sizes = [1, 4, 128], strides = [1, 1, 1]} : vector<8x4x128xf32> to vector<1x4x128xf32>
    %102 = vector.shape_cast %101 : vector<1x4x128xf32> to vector<4x128xf32>
    %cst_28 = arith.constant 5.000000e-01 : f32
    %103 = vector.broadcast %cst_28 : f32 to vector<4x128xf32>
    %104 = arith.mulf %102, %103 : vector<4x128xf32>
    %105 = vector.shape_cast %104 : vector<4x128xf32> to vector<1x4x128xf32>
    %106 = vector.broadcast %105 : vector<1x4x128xf32> to vector<8x4x128xf32>
    %107 = arith.mulf %106, %16 : vector<8x4x128xf32>
    %cst_29 = arith.constant dense<0.000000e+00> : vector<8x128xf32>
    %108 = vector.multi_reduction <add>, %107, %cst_29 [1] : vector<8x4x128xf32> to vector<8x128xf32>
    %109 = vector.shape_cast %108 : vector<8x128xf32> to vector<8x1x128xf32>
    %cst_30 = arith.constant dense<0xFF800000> : vector<1x128xf32>
    %110 = vector.multi_reduction <maximumf>, %109, %cst_30 [0] : vector<8x1x128xf32> to vector<1x128xf32>
    %111 = vector.shape_cast %110 : vector<1x128xf32> to vector<1x1x128xf32>
    %112 = vector.broadcast %111 : vector<1x1x128xf32> to vector<8x1x128xf32>
    %113 = arith.subf %109, %112 : vector<8x1x128xf32>
    %114 = math.exp %113 : vector<8x1x128xf32>
    %cst_31 = arith.constant dense<0.000000e+00> : vector<1x128xf32>
    %115 = vector.multi_reduction <add>, %114, %cst_31 [0] : vector<8x1x128xf32> to vector<1x128xf32>
    %116 = vector.shape_cast %115 : vector<1x128xf32> to vector<1x1x128xf32>
    %117 = tpu.reciprocal %116 {approx = true} : vector<1x1x128xf32> -> vector<1x1x128xf32>
    %118 = vector.broadcast %117 : vector<1x1x128xf32> to vector<8x1x128xf32>
    %119 = arith.mulf %114, %118 : vector<8x1x128xf32>
    %120 = vector.broadcast %119 : vector<8x1x128xf32> to vector<8x4x128xf32>
    %121 = arith.mulf %120, %16 : vector<8x4x128xf32>
    %cst_32 = arith.constant dense<0.000000e+00> : vector<4x128xf32>
    %122 = vector.multi_reduction <add>, %121, %cst_32 [0] : vector<8x4x128xf32> to vector<4x128xf32>
    %123 = vector.extract_strided_slice %0 {offsets = [3, 0, 0], sizes = [1, 4, 128], strides = [1, 1, 1]} : vector<8x4x128xf32> to vector<1x4x128xf32>
    %124 = vector.shape_cast %123 : vector<1x4x128xf32> to vector<4x128xf32>
    %125 = arith.addf %122, %124 : vector<4x128xf32>
    %c3 = arith.constant 3 : index
    %c0_33 = arith.constant 0 : index
    %c0_34 = arith.constant 0 : index
    %126 = vector.load %arg2[%c3, %c0_33, %c0_34] : memref<8x4x128xf32, #tpu.memory_space<vmem>>, vector<1x4x128xf32>
    %127 = vector.shape_cast %126 : vector<1x4x128xf32> to vector<4x128xf32>
    %128 = vector.shape_cast %125 : vector<4x128xf32> to vector<1x4x128xf32>
    tpu.vector_store %arg2[%c3, %c0_33, %c0_34], %128 {strides = array<i32>} : memref<8x4x128xf32, #tpu.memory_space<vmem>>, vector<1x4x128xf32>,
    %129 = vector.extract_strided_slice %16 {offsets = [4, 0, 0], sizes = [1, 4, 128], strides = [1, 1, 1]} : vector<8x4x128xf32> to vector<1x4x128xf32>
    %130 = vector.shape_cast %129 : vector<1x4x128xf32> to vector<4x128xf32>
    %cst_35 = arith.constant 5.000000e-01 : f32
    %131 = vector.broadcast %cst_35 : f32 to vector<4x128xf32>
    %132 = arith.mulf %130, %131 : vector<4x128xf32>
    %133 = vector.shape_cast %132 : vector<4x128xf32> to vector<1x4x128xf32>
    %134 = vector.broadcast %133 : vector<1x4x128xf32> to vector<8x4x128xf32>
    %135 = arith.mulf %134, %16 : vector<8x4x128xf32>
    %cst_36 = arith.constant dense<0.000000e+00> : vector<8x128xf32>
    %136 = vector.multi_reduction <add>, %135, %cst_36 [1] : vector<8x4x128xf32> to vector<8x128xf32>
    %137 = vector.shape_cast %136 : vector<8x128xf32> to vector<8x1x128xf32>
    %cst_37 = arith.constant dense<0xFF800000> : vector<1x128xf32>
    %138 = vector.multi_reduction <maximumf>, %137, %cst_37 [0] : vector<8x1x128xf32> to vector<1x128xf32>
    %139 = vector.shape_cast %138 : vector<1x128xf32> to vector<1x1x128xf32>
    %140 = vector.broadcast %139 : vector<1x1x128xf32> to vector<8x1x128xf32>
    %141 = arith.subf %137, %140 : vector<8x1x128xf32>
    %142 = math.exp %141 : vector<8x1x128xf32>
    %cst_38 = arith.constant dense<0.000000e+00> : vector<1x128xf32>
    %143 = vector.multi_reduction <add>, %142, %cst_38 [0] : vector<8x1x128xf32> to vector<1x128xf32>
    %144 = vector.shape_cast %143 : vector<1x128xf32> to vector<1x1x128xf32>
    %145 = tpu.reciprocal %144 {approx = true} : vector<1x1x128xf32> -> vector<1x1x128xf32>
    %146 = vector.broadcast %145 : vector<1x1x128xf32> to vector<8x1x128xf32>
    %147 = arith.mulf %142, %146 : vector<8x1x128xf32>
    %148 = vector.broadcast %147 : vector<8x1x128xf32> to vector<8x4x128xf32>
    %149 = arith.mulf %148, %16 : vector<8x4x128xf32>
    %cst_39 = arith.constant dense<0.000000e+00> : vector<4x128xf32>
    %150 = vector.multi_reduction <add>, %149, %cst_39 [0] : vector<8x4x128xf32> to vector<4x128xf32>
    %151 = vector.extract_strided_slice %0 {offsets = [4, 0, 0], sizes = [1, 4, 128], strides = [1, 1, 1]} : vector<8x4x128xf32> to vector<1x4x128xf32>
    %152 = vector.shape_cast %151 : vector<1x4x128xf32> to vector<4x128xf32>
    %153 = arith.addf %150, %152 : vector<4x128xf32>
    %c4 = arith.constant 4 : index
    %c0_40 = arith.constant 0 : index
    %c0_41 = arith.constant 0 : index
    %154 = vector.load %arg2[%c4, %c0_40, %c0_41] : memref<8x4x128xf32, #tpu.memory_space<vmem>>, vector<1x4x128xf32>
    %155 = vector.shape_cast %154 : vector<1x4x128xf32> to vector<4x128xf32>
    %156 = vector.shape_cast %153 : vector<4x128xf32> to vector<1x4x128xf32>
    tpu.vector_store %arg2[%c4, %c0_40, %c0_41], %156 {strides = array<i32>} : memref<8x4x128xf32, #tpu.memory_space<vmem>>, vector<1x4x128xf32>,
    %157 = vector.extract_strided_slice %16 {offsets = [5, 0, 0], sizes = [1, 4, 128], strides = [1, 1, 1]} : vector<8x4x128xf32> to vector<1x4x128xf32>
    %158 = vector.shape_cast %157 : vector<1x4x128xf32> to vector<4x128xf32>
    %cst_42 = arith.constant 5.000000e-01 : f32
    %159 = vector.broadcast %cst_42 : f32 to vector<4x128xf32>
    %160 = arith.mulf %158, %159 : vector<4x128xf32>
    %161 = vector.shape_cast %160 : vector<4x128xf32> to vector<1x4x128xf32>
    %162 = vector.broadcast %161 : vector<1x4x128xf32> to vector<8x4x128xf32>
    %163 = arith.mulf %162, %16 : vector<8x4x128xf32>
    %cst_43 = arith.constant dense<0.000000e+00> : vector<8x128xf32>
    %164 = vector.multi_reduction <add>, %163, %cst_43 [1] : vector<8x4x128xf32> to vector<8x128xf32>
    %165 = vector.shape_cast %164 : vector<8x128xf32> to vector<8x1x128xf32>
    %cst_44 = arith.constant dense<0xFF800000> : vector<1x128xf32>
    %166 = vector.multi_reduction <maximumf>, %165, %cst_44 [0] : vector<8x1x128xf32> to vector<1x128xf32>
    %167 = vector.shape_cast %166 : vector<1x128xf32> to vector<1x1x128xf32>
    %168 = vector.broadcast %167 : vector<1x1x128xf32> to vector<8x1x128xf32>
    %169 = arith.subf %165, %168 : vector<8x1x128xf32>
    %170 = math.exp %169 : vector<8x1x128xf32>
    %cst_45 = arith.constant dense<0.000000e+00> : vector<1x128xf32>
    %171 = vector.multi_reduction <add>, %170, %cst_45 [0] : vector<8x1x128xf32> to vector<1x128xf32>
    %172 = vector.shape_cast %171 : vector<1x128xf32> to vector<1x1x128xf32>
    %173 = tpu.reciprocal %172 {approx = true} : vector<1x1x128xf32> -> vector<1x1x128xf32>
    %174 = vector.broadcast %173 : vector<1x1x128xf32> to vector<8x1x128xf32>
    %175 = arith.mulf %170, %174 : vector<8x1x128xf32>
    %176 = vector.broadcast %175 : vector<8x1x128xf32> to vector<8x4x128xf32>
    %177 = arith.mulf %176, %16 : vector<8x4x128xf32>
    %cst_46 = arith.constant dense<0.000000e+00> : vector<4x128xf32>
    %178 = vector.multi_reduction <add>, %177, %cst_46 [0] : vector<8x4x128xf32> to vector<4x128xf32>
    %179 = vector.extract_strided_slice %0 {offsets = [5, 0, 0], sizes = [1, 4, 128], strides = [1, 1, 1]} : vector<8x4x128xf32> to vector<1x4x128xf32>
    %180 = vector.shape_cast %179 : vector<1x4x128xf32> to vector<4x128xf32>
    %181 = arith.addf %178, %180 : vector<4x128xf32>
    %c5 = arith.constant 5 : index
    %c0_47 = arith.constant 0 : index
    %c0_48 = arith.constant 0 : index
    %182 = vector.load %arg2[%c5, %c0_47, %c0_48] : memref<8x4x128xf32, #tpu.memory_space<vmem>>, vector<1x4x128xf32>
    %183 = vector.shape_cast %182 : vector<1x4x128xf32> to vector<4x128xf32>
    %184 = vector.shape_cast %181 : vector<4x128xf32> to vector<1x4x128xf32>
    tpu.vector_store %arg2[%c5, %c0_47, %c0_48], %184 {strides = array<i32>} : memref<8x4x128xf32, #tpu.memory_space<vmem>>, vector<1x4x128xf32>,
    %185 = vector.extract_strided_slice %16 {offsets = [6, 0, 0], sizes = [1, 4, 128], strides = [1, 1, 1]} : vector<8x4x128xf32> to vector<1x4x128xf32>
    %186 = vector.shape_cast %185 : vector<1x4x128xf32> to vector<4x128xf32>
    %cst_49 = arith.constant 5.000000e-01 : f32
    %187 = vector.broadcast %cst_49 : f32 to vector<4x128xf32>
    %188 = arith.mulf %186, %187 : vector<4x128xf32>
    %189 = vector.shape_cast %188 : vector<4x128xf32> to vector<1x4x128xf32>
    %190 = vector.broadcast %189 : vector<1x4x128xf32> to vector<8x4x128xf32>
    %191 = arith.mulf %190, %16 : vector<8x4x128xf32>
    %cst_50 = arith.constant dense<0.000000e+00> : vector<8x128xf32>
    %192 = vector.multi_reduction <add>, %191, %cst_50 [1] : vector<8x4x128xf32> to vector<8x128xf32>
    %193 = vector.shape_cast %192 : vector<8x128xf32> to vector<8x1x128xf32>
    %cst_51 = arith.constant dense<0xFF800000> : vector<1x128xf32>
    %194 = vector.multi_reduction <maximumf>, %193, %cst_51 [0] : vector<8x1x128xf32> to vector<1x128xf32>
    %195 = vector.shape_cast %194 : vector<1x128xf32> to vector<1x1x128xf32>
    %196 = vector.broadcast %195 : vector<1x1x128xf32> to vector<8x1x128xf32>
    %197 = arith.subf %193, %196 : vector<8x1x128xf32>
    %198 = math.exp %197 : vector<8x1x128xf32>
    %cst_52 = arith.constant dense<0.000000e+00> : vector<1x128xf32>
    %199 = vector.multi_reduction <add>, %198, %cst_52 [0] : vector<8x1x128xf32> to vector<1x128xf32>
    %200 = vector.shape_cast %199 : vector<1x128xf32> to vector<1x1x128xf32>
    %201 = tpu.reciprocal %200 {approx = true} : vector<1x1x128xf32> -> vector<1x1x128xf32>
    %202 = vector.broadcast %201 : vector<1x1x128xf32> to vector<8x1x128xf32>
    %203 = arith.mulf %198, %202 : vector<8x1x128xf32>
    %204 = vector.broadcast %203 : vector<8x1x128xf32> to vector<8x4x128xf32>
    %205 = arith.mulf %204, %16 : vector<8x4x128xf32>
    %cst_53 = arith.constant dense<0.000000e+00> : vector<4x128xf32>
    %206 = vector.multi_reduction <add>, %205, %cst_53 [0] : vector<8x4x128xf32> to vector<4x128xf32>
    %207 = vector.extract_strided_slice %0 {offsets = [6, 0, 0], sizes = [1, 4, 128], strides = [1, 1, 1]} : vector<8x4x128xf32> to vector<1x4x128xf32>
    %208 = vector.shape_cast %207 : vector<1x4x128xf32> to vector<4x128xf32>
    %209 = arith.addf %206, %208 : vector<4x128xf32>
    %c6 = arith.constant 6 : index
    %c0_54 = arith.constant 0 : index
    %c0_55 = arith.constant 0 : index
    %210 = vector.load %arg2[%c6, %c0_54, %c0_55] : memref<8x4x128xf32, #tpu.memory_space<vmem>>, vector<1x4x128xf32>
    %211 = vector.shape_cast %210 : vector<1x4x128xf32> to vector<4x128xf32>
    %212 = vector.shape_cast %209 : vector<4x128xf32> to vector<1x4x128xf32>
    tpu.vector_store %arg2[%c6, %c0_54, %c0_55], %212 {strides = array<i32>} : memref<8x4x128xf32, #tpu.memory_space<vmem>>, vector<1x4x128xf32>,
    %213 = vector.extract_strided_slice %16 {offsets = [7, 0, 0], sizes = [1, 4, 128], strides = [1, 1, 1]} : vector<8x4x128xf32> to vector<1x4x128xf32>
    %214 = vector.shape_cast %213 : vector<1x4x128xf32> to vector<4x128xf32>
    %cst_56 = arith.constant 5.000000e-01 : f32
    %215 = vector.broadcast %cst_56 : f32 to vector<4x128xf32>
    %216 = arith.mulf %214, %215 : vector<4x128xf32>
    %217 = vector.shape_cast %216 : vector<4x128xf32> to vector<1x4x128xf32>
    %218 = vector.broadcast %217 : vector<1x4x128xf32> to vector<8x4x128xf32>
    %219 = arith.mulf %218, %16 : vector<8x4x128xf32>
    %cst_57 = arith.constant dense<0.000000e+00> : vector<8x128xf32>
    %220 = vector.multi_reduction <add>, %219, %cst_57 [1] : vector<8x4x128xf32> to vector<8x128xf32>
    %221 = vector.shape_cast %220 : vector<8x128xf32> to vector<8x1x128xf32>
    %cst_58 = arith.constant dense<0xFF800000> : vector<1x128xf32>
    %222 = vector.multi_reduction <maximumf>, %221, %cst_58 [0] : vector<8x1x128xf32> to vector<1x128xf32>
    %223 = vector.shape_cast %222 : vector<1x128xf32> to vector<1x1x128xf32>
    %224 = vector.broadcast %223 : vector<1x1x128xf32> to vector<8x1x128xf32>
    %225 = arith.subf %221, %224 : vector<8x1x128xf32>
    %226 = math.exp %225 : vector<8x1x128xf32>
    %cst_59 = arith.constant dense<0.000000e+00> : vector<1x128xf32>
    %227 = vector.multi_reduction <add>, %226, %cst_59 [0] : vector<8x1x128xf32> to vector<1x128xf32>
    %228 = vector.shape_cast %227 : vector<1x128xf32> to vector<1x1x128xf32>
    %229 = tpu.reciprocal %228 {approx = true} : vector<1x1x128xf32> -> vector<1x1x128xf32>
    %230 = vector.broadcast %229 : vector<1x1x128xf32> to vector<8x1x128xf32>
    %231 = arith.mulf %226, %230 : vector<8x1x128xf32>
    %232 = vector.broadcast %231 : vector<8x1x128xf32> to vector<8x4x128xf32>
    %233 = arith.mulf %232, %16 : vector<8x4x128xf32>
    %cst_60 = arith.constant dense<0.000000e+00> : vector<4x128xf32>
    %234 = vector.multi_reduction <add>, %233, %cst_60 [0] : vector<8x4x128xf32> to vector<4x128xf32>
    %235 = vector.extract_strided_slice %0 {offsets = [7, 0, 0], sizes = [1, 4, 128], strides = [1, 1, 1]} : vector<8x4x128xf32> to vector<1x4x128xf32>
    %236 = vector.shape_cast %235 : vector<1x4x128xf32> to vector<4x128xf32>
    %237 = arith.addf %234, %236 : vector<4x128xf32>
    %c7 = arith.constant 7 : index
    %c0_61 = arith.constant 0 : index
    %c0_62 = arith.constant 0 : index
    %238 = vector.load %arg2[%c7, %c0_61, %c0_62] : memref<8x4x128xf32, #tpu.memory_space<vmem>>, vector<1x4x128xf32>
    %239 = vector.shape_cast %238 : vector<1x4x128xf32> to vector<4x128xf32>
    %240 = vector.shape_cast %237 : vector<4x128xf32> to vector<1x4x128xf32>
    tpu.vector_store %arg2[%c7, %c0_61, %c0_62], %240 {strides = array<i32>} : memref<8x4x128xf32, #tpu.memory_space<vmem>>, vector<1x4x128xf32>,
    return
  }
  func.func @transform_0(%arg0: i32) -> (i32, i32, i32) {
    %c0_i32 = arith.constant 0 : i32
    %c0_i32_0 = arith.constant 0 : i32
    %c0_i32_1 = arith.constant 0 : i32
    return %c0_i32, %c0_i32_0, %arg0 : i32, i32, i32
  }
  func.func @transform_1(%arg0: i32) -> (i32, i32, i32) {
    %c0_i32 = arith.constant 0 : i32
    %c0_i32_0 = arith.constant 0 : i32
    %c0_i32_1 = arith.constant 0 : i32
    return %c0_i32, %c0_i32_0, %arg0 : i32, i32, i32
  }
}

</mosaic_0001>

<bundles_post_ra>
// kernel: tpu_custom_call.1
= control target key start
LH: loop header
LB: loop body
LE: loop exit
PB: predicated region body
PF: predicated region fallthrough
CT: control target
= control target key end

     0   :  { %6 = vsyncpa [#allocation3], 0  ;;  %s3156_s0 = inlined_call_operand.hbm [shape: f32[8,4,512], index: 0, kind: input, shape index: {}]   ;;  %s3157_s1 = inlined_call_operand.hbm [shape: f32[8,4,512], index: 1, kind: output, shape index: {}]  }
   0x1   :  { %8 = vsyncpa [#allocation3 + $0x1], 0 }
   0x2   :  { %9 = vsyncpa [#allocation4], 0 }
   0x3   :  { %11 = vsyncpa [#allocation4 + $0x1], 0  ;;  %s1940_s6 = smov 0   ;;  %s1942_s7 = smov 0  }
   0x4   :  { %s1944_s8 = smov 0   ;;  %s1946_s9 = smov 0  }
   0x5 LB: > { %s1961_s10 = sadd.s32 4294967295, %s1921_s9   ;;  %s1583_s11 = sadd.s32 4294967294, %s1921_s9   ;;  %s1921_s9 = sphi %s1946_s9, %s3305_s9   ;;  %s1917_s8 = sphi %s1944_s8, %s3304_s8   ;;  %s1913_s7 = sphi %s1942_s7, %s3303_s7   ;;  %s1909_s6 = sphi %s1940_s6, %s3302_s6  }
   0x6   : > { %s1965_s12 = sadd.s32 1, %s1921_s9   ;;  %s24_s13 = sadd.s32 1, %s1917_s8 }
   0x7   : > { %s21_s14 = ssub.s32 %s1921_s9, %s1965_s12  ;;  %p31_p0 = scmp.ne.s32.totalorder %s1917_s8, %s1913_s7 }
   0x8   : > { %p22_p1 = scmp.eq.s32.totalorder %s21_s14, 0  ;;  %p32_p2 = scmp.eq.s32.totalorder %s1921_s9, 0 }
   0x9   : > { %p37_p3 = scmp.ne.s32.totalorder %s1913_s7, %s1909_s6  ;;  %p38_p4 = scmp.eq.s32.totalorder %s1961_s10, 0 }
   0xa   : > { %s1977_s15 = scalar_select %p22_p1, %s1917_s8, %s24_s13  }
   0xb   : > { %p1979_p5 = por %p32_p2, %p31_p0  ;;  %p1983_p6 = por %p38_p4, %p37_p3 }
   0xc   : > { %p61_p7 = scmp.eq.s32.totalorder %s1961_s10, 3  ;;  %p67_p8 = scmp.eq.s32.totalorder %s1583_s11, 3 }
   0xd   : > { %p1614_p9 = scmp.lt.s32.totalorder %s1921_s9, 4  ;;  %s87_s20 = sand.u32 1, %s1917_s8  }
   0xe   : > { %p1989_p10 = por %p61_p7, %p31_p0  ;;  %p1993_p11 = por %p67_p8, %p37_p3 }
   0xf   : > { %s1587_s21 = sshll.u32 %s1921_s9, 2  ;;  %s1586_s22 = sshll.u32 %s87_s20, 5 }
  0x10   : > { %s95_s25 = scalar_lea.hbm %s3156_s0, %s1587_s21  ;;  %s91_s27 = scalar_lea.vmem [#allocation2], %s1586_s22 }
  0x11   : > { %s96_s26 = sshll.u32 %s95_s25, 4  ;;  %s98_s28 = sshll.u32 %s91_s27, 4  ;;  %s97_s26 = int_to_ptr.hbm [resolvable:$true] %s96_s26  ;;  %s99_s28 = int_to_ptr.vmem [resolvable:$true] %s98_s28 }
  0x12   : > { %p2004_p12 = pnand %p1614_p9, %p1979_p5  ;;  %p1588_p13 = scmp.ge.s32.totalorder %s1921_s9, 1 }
  0x13   : > { %s88_s30 = scalar_lea.sflag [#allocation3], %s87_s20  ;;  %s1825_s2 = sshra.s32 %s97_s26, 4  ;;  %s1826_s2 = int_to_ptr.hbm [resolvable:$true] %s1825_s2 }
  0x14   : > { %s1827_s3 = scalar_lea.hbm %s1826_s2, 32  ;;  %p1829_p1 = pneg %p2004_p12 }
  0x15   : > { %p1828_p0 = scmp.ne.s32.totalorder %s1826_s2, %s1827_s3  ;;  %s1832_s11 = scalar_lea.hbm %s3156_s0, 128 }
  0x16   : > { %p1833_p4 = scmp.lt.s32.totalorder %s1826_s2, %s3156_s0  ;;  %p1834_p5 = scmp.lt.s32.totalorder %s1832_s11, %s1827_s3 }
  0x17   : > { %p1830_p2 = pnand %p1829_p1, %p1828_p0 }
  0x18   : > { %p1835_p7 = por %p1834_p5, %p1833_p4 }
  0x19   : > { %p1831_p3 = pneg %p1830_p2 }
  0x1b   : > { %p1836_p8 = pnand %p1835_p7, %p1831_p3 }
  0x1d   : > { %1839 = shalt.err (!%p1836_p8)
}
  0x1e   : > { %s1923_s16 = smov 256   ;;  %s1924_s20 = smov 64  }
  0x1f   : > { %s1925_s21 = smov 4   ;;  %p106_p9 = scmp.lt.s32.totalorder %s1921_s9, 5 }
  0x20   : > { %1609 = dma.hbm_to_vmem [thread:$0]  (!%p2004_p12), %s97_s26, 512, %s99_s28, %s88_s30, %s1923_s16, %s1924_s20, %s1925_s21  }
  0x21   : > { %p107_p0 = pnand %p1588_p13, %p106_p9 }
  0x22   : > { %s2023_s22 = sand.u32 (!%p107_p0), 1, %s1913_s7  }
  0x23   : > { %110 = sbr.rel (%p107_p0) target bundleno = 428 (0x1ac), region = 24  ;;  %s1589_s23 = sshll.u32 (!%p107_p0), %s2023_s22, 5 }
  0x24   : > { %s113_s24 = scalar_lea.sflag (!%p107_p0), [#allocation3], %s2023_s22  ;;  %s2029_s25 = scalar_lea.vmem (!%p107_p0), [#allocation2], %s1589_s23 }
  0x28   : > { %1900 = dma.done.wait (%p1983_p6), %s113_s24, 512  }
  0x29   : > { %1902 = vsyncadd (%p1983_p6), %s113_s24, 4294966784  ;;  %vm3158_vm0 = vcmask 1043456   ;;  %v2036_v0 = vld [vmem:[%s2029_s25] sm:$0xf]  ;;  %v2039_v1 = vld [vmem:[%s2029_s25 + $0x4] sm:$0xf] }
  0x2a   : > { %v2042_v2 = vld [vmem:[%s2029_s25 + $0x8] sm:$0xf]  ;;  %v2045_v3 = vld [vmem:[%s2029_s25 + $0xc] sm:$0xf]  ;;  %v2048_v4 = vld [vmem:[%s2029_s25 + $0x10] sm:$0xf] }
  0x2b   : > { %v2051_v5 = vld [vmem:[%s2029_s25 + $0x14] sm:$0xf]  ;;  %v2054_v6 = vld [vmem:[%s2029_s25 + $0x18] sm:$0xf]  ;;  %v145_v7 = vsel %vm3158_vm0, %v2036_v0, 0.0  ;;  %v152_v8 = vsel %vm3158_vm0, %v2039_v1, 0.0 }
  0x2c   : > { %v1926_v9 = vmov 4.0   ;;  %v2061_v10 = vld [vmem:[%s2029_s25 + $0x1c] sm:$0xf]  ;;  %v146_v11 = vrot.slane %v145_v7, 4  ;;  %v153_v12 = vrot.slane %v152_v8, 4  ;;  %v159_v13 = vsel %vm3158_vm0, %v2042_v2, 0.0 }
  0x2d   : > { %1655 = vrcp.f32 %v1926_v9  ;;  %v166_v14 = vsel %vm3158_vm0, %v2045_v3, 0.0  ;;  %v160_v15 = vrot.slane %v159_v13, 4  ;;  %v173_v17 = vsel %vm3158_vm0, %v2048_v4, 0.0  ;;  %s2545_s17 = scalar_lea.vmem [#allocation5], %s1589_s23  ;;  %s1599_s26 = sshll.u32 %s1961_s10, 2 }
  0x2e   : > { %v167_v16 = vrot.slane %v166_v14, 4  ;;  %v180_v18 = vsel %vm3158_vm0, %v2051_v5, 0.0  ;;  %v147_v19 = vadd.f32 %v146_v11, %v145_v7  ;;  %v154_v20 = vadd.f32 %v153_v12, %v152_v8  ;;  %s1506_s29 = scalar_lea.hbm %s3157_s1, %s1599_s26  ;;  %s1507_s30 = sshll.u32 %s2545_s17, 4  ;;  %s1508_s30 = int_to_ptr.vmem [resolvable:$true] %s1507_s30 }
  0x2f   : > { %v174_v21 = vrot.slane %v173_v17, 4  ;;  %v181_v22 = vrot.slane %v180_v18, 4  ;;  %v161_v23 = vadd.f32 %v160_v15, %v159_v13  ;;  %v187_v25 = vsel %vm3158_vm0, %v2054_v6, 0.0  ;;  %s1509_s10 = sshll.u32 %s1506_s29, 4  ;;  %s1496_s2 = scalar_lea.sflag [#allocation4], %s2023_s22  ;;  %s1510_s10 = int_to_ptr.hbm [resolvable:$true] %s1509_s10 }
  0x30   : > { %v168_v24 = vadd.f32 %v167_v16, %v166_v14  ;;  %v194_v26 = vsel %vm3158_vm0, %v2061_v10, 0.0  ;;  %v148_v27 = vrot.slane %v147_v19, 2  ;;  %v155_v28 = vrot.slane %v154_v20, 2  ;;  %s1869_s3 = sshra.s32 %s1510_s10, 4  ;;  %s1875_s13 = scalar_lea.hbm %s3157_s1, 128  ;;  %s1870_s3 = int_to_ptr.hbm [resolvable:$true] %s1869_s3 }
  0x31   : > { %v175_v29 = vadd.f32 %v174_v21, %v173_v17  ;;  %v182_v30 = vadd.f32 %v181_v22, %v180_v18  ;;  %v162_v32 = vrot.slane %v161_v23, 2  ;;  %v188_v34 = vrot.slane %v187_v25, 4  ;;  %s1871_s4 = scalar_lea.hbm %s1870_s3, 32  ;;  %p1876_p1 = scmp.lt.s32.totalorder %s1870_s3, %s3157_s1 }
  0x32   : > { %v169_v33 = vrot.slane %v168_v24, 2  ;;  %v195_v35 = vrot.slane %v194_v26, 4  ;;  %v149_v40 = vadd.f32 %v148_v27, %v147_v19  ;;  %v156_v41 = vadd.f32 %v155_v28, %v154_v20  ;;  %p1872_p6 = scmp.ne.s32.totalorder %s1870_s3, %s1871_s4  ;;  %p1877_p2 = scmp.lt.s32.totalorder %s1875_s13, %s1871_s4 }
  0x33   : > { %v1656_v31 = vpop.eup %1655  ;;  %v176_v36 = vrot.slane %v175_v29, 2  ;;  %v183_v37 = vrot.slane %v182_v30, 2  ;;  %v189_v38 = vadd.f32 %v188_v34, %v187_v25  ;;  %v163_v42 = vadd.f32 %v162_v32, %v161_v23 }
  0x34   : > { %v196_v39 = vadd.f32 %v195_v35, %v194_v26  ;;  %v170_v43 = vadd.f32 %v169_v33, %v168_v24  ;;  %v150_v50 = vrot.slane %v149_v40, 1  ;;  %v202_v51 = vmul.f32 4.0, %v1656_v31  ;;  %p1873_p12 = pnand %p1872_p6, %p1989_p10  ;;  %p1878_p3 = por %p1877_p2, %p1876_p1 }
  0x35   : > { %v177_v44 = vadd.f32 %v176_v36, %v175_v29  ;;  %v190_v45 = vrot.slane %v189_v38, 2  ;;  %v184_v47 = vadd.f32 %v183_v37, %v182_v30  ;;  %v157_v52 = vrot.slane %v156_v41, 1 }
  0x36   : > { %v197_v46 = vrot.slane %v196_v39, 2  ;;  %v164_v53 = vrot.slane %v163_v42, 1  ;;  %v171_v54 = vrot.slane %v170_v43, 1  ;;  %v203_v59 = vsub.f32 1.0, %v202_v51  ;;  %p1874_p13 = pneg %p1873_p12 }
  0x37   : > { %v191_v48 = vadd.f32 %v190_v45, %v189_v38  ;;  %v178_v55 = vrot.slane %v177_v44, 1  ;;  %v185_v56 = vrot.slane %v184_v47, 1  ;;  %v151_v60 = vadd.f32 %v150_v50, %v149_v40 }
  0x38   : > { %v198_v49 = vadd.f32 %v197_v46, %v196_v39  ;;  %v204_v61 = vmul.f32 %v1656_v31, %v203_v59  ;;  %vm206_vm1 = vweird.f32 %v1656_v31  ;;  %v158_v62 = vadd.f32 %v157_v52, %v156_v41  ;;  %p1879_p4 = pnand %p1878_p3, %p1874_p13 }
  0x39   : > { %v192_v57 = vrot.slane %v191_v48, 1  ;;  %v165_v63 = vadd.f32 %v164_v53, %v163_v42  ;;  %v172_v7 = vadd.f32 %v171_v54, %v170_v43  ;;  %v179_v8 = vadd.f32 %v178_v55, %v177_v44 }
  0x3a   : > { %v199_v58 = vrot.slane %v198_v49, 1  ;;  %v186_v9 = vadd.f32 %v185_v56, %v184_v47  ;;  %v205_v13 = vadd.f32 %v1656_v31, %v204_v61 }
  0x3b   : > { %v193_v11 = vadd.f32 %v192_v57, %v191_v48 }
  0x3c   : > { %v200_v12 = vadd.f32 %v199_v58, %v198_v49  ;;  %v2075_v14 = vsel %vm206_vm1, %v1656_v31, %v205_v13 }
  0x3d   : > { %v208_v15 = vmul.f32 %v2075_v14, %v151_v60  ;;  %v209_v16 = vmul.f32 %v2075_v14, %v158_v62  ;;  %v210_v17 = vmul.f32 %v2075_v14, %v165_v63  ;;  %v211_v18 = vmul.f32 %v2075_v14, %v172_v7 }
  0x3e   : > { %v212_v19 = vmul.f32 %v2075_v14, %v179_v8  ;;  %v213_v20 = vmul.f32 %v2075_v14, %v186_v9  ;;  %v214_v21 = vmul.f32 %v2075_v14, %v193_v11  ;;  %v215_v22 = vmul.f32 %v2075_v14, %v200_v12 }
  0x3f   : > { %v2086_v23 = vsub.f32 %v2036_v0, %v208_v15  ;;  %v2089_v24 = vsub.f32 %v2039_v1, %v209_v16  ;;  %v2092_v25 = vsub.f32 %v2042_v2, %v210_v17  ;;  %v2095_v26 = vsub.f32 %v2045_v3, %v211_v18 }
  0x40   : > { %v2098_v27 = vsub.f32 %v2048_v4, %v212_v19  ;;  %v2101_v28 = vsub.f32 %v2051_v5, %v213_v20  ;;  %v2104_v29 = vsub.f32 %v2054_v6, %v214_v21  ;;  %v2107_v0 = vsub.f32 %v2061_v10, %v215_v22 }
  0x41   : > { %v224_v1 = vmul.f32 %v2086_v23, %v2086_v23  ;;  %v225_v2 = vmul.f32 %v2089_v24, %v2089_v24  ;;  %v226_v3 = vmul.f32 %v2092_v25, %v2092_v25  ;;  %v227_v4 = vmul.f32 %v2095_v26, %v2095_v26 }
  0x42   : > { %v228_v5 = vmul.f32 %v2098_v27, %v2098_v27  ;;  %v229_v6 = vmul.f32 %v2101_v28, %v2101_v28  ;;  %v230_v10 = vmul.f32 %v2104_v29, %v2104_v29  ;;  %v231_v30 = vmul.f32 %v2107_v0, %v2107_v0 }
  0x43   : > { %v232_v31 = vsel %vm3158_vm0, %v224_v1, 0.0  ;;  %v239_v32 = vsel %vm3158_vm0, %v225_v2, 0.0  ;;  %v246_v33 = vsel %vm3158_vm0, %v226_v3, 0.0  ;;  %v253_v34 = vsel %vm3158_vm0, %v227_v4, 0.0 }
  0x44   : > { %v233_v35 = vrot.slane %v232_v31, 4  ;;  %v240_v36 = vrot.slane %v239_v32, 4  ;;  %v247_v37 = vrot.slane %v246_v33, 4  ;;  %v254_v38 = vrot.slane %v253_v34, 4 }
  0x45   : > { %v260_v39 = vsel %vm3158_vm0, %v228_v5, 0.0  ;;  %v267_v40 = vsel %vm3158_vm0, %v229_v6, 0.0  ;;  %v274_v41 = vsel %vm3158_vm0, %v230_v10, 0.0  ;;  %v281_v42 = vsel %vm3158_vm0, %v231_v30, 0.0 }
  0x46   : > { %v234_v43 = vadd.f32 %v233_v35, %v232_v31  ;;  %v241_v44 = vadd.f32 %v240_v36, %v239_v32  ;;  %v248_v45 = vadd.f32 %v247_v37, %v246_v33  ;;  %v255_v46 = vadd.f32 %v254_v38, %v253_v34 }
  0x47   : > { %v261_v47 = vrot.slane %v260_v39, 4  ;;  %v268_v48 = vrot.slane %v267_v40, 4  ;;  %v275_v49 = vrot.slane %v274_v41, 4  ;;  %v282_v50 = vrot.slane %v281_v42, 4 }
  0x48   : > { %v235_v51 = vrot.slane %v234_v43, 2  ;;  %v242_v52 = vrot.slane %v241_v44, 2  ;;  %v249_v53 = vrot.slane %v248_v45, 2  ;;  %v256_v54 = vrot.slane %v255_v46, 2 }
  0x49   : > { %v262_v55 = vadd.f32 %v261_v47, %v260_v39  ;;  %v269_v56 = vadd.f32 %v268_v48, %v267_v40  ;;  %v276_v57 = vadd.f32 %v275_v49, %v274_v41  ;;  %v283_v58 = vadd.f32 %v282_v50, %v281_v42 }
  0x4a   : > { %v236_v59 = vadd.f32 %v235_v51, %v234_v43  ;;  %v243_v60 = vadd.f32 %v242_v52, %v241_v44  ;;  %v250_v61 = vadd.f32 %v249_v53, %v248_v45  ;;  %v257_v62 = vadd.f32 %v256_v54, %v255_v46 }
  0x4b   : > { %v263_v63 = vrot.slane %v262_v55, 2  ;;  %v270_v7 = vrot.slane %v269_v56, 2  ;;  %v277_v8 = vrot.slane %v276_v57, 2  ;;  %v284_v9 = vrot.slane %v283_v58, 2 }
  0x4c   : > { %v237_v11 = vrot.slane %v236_v59, 1  ;;  %v244_v12 = vrot.slane %v243_v60, 1  ;;  %v251_v13 = vrot.slane %v250_v61, 1  ;;  %v258_v15 = vrot.slane %v257_v62, 1 }
  0x4d   : > { %v264_v16 = vadd.f32 %v263_v63, %v262_v55  ;;  %v271_v17 = vadd.f32 %v270_v7, %v269_v56  ;;  %v278_v18 = vadd.f32 %v277_v8, %v276_v57  ;;  %v285_v19 = vadd.f32 %v284_v9, %v283_v58 }
  0x4e   : > { %v238_v20 = vadd.f32 %v237_v11, %v236_v59  ;;  %v245_v21 = vadd.f32 %v244_v12, %v243_v60  ;;  %v252_v22 = vadd.f32 %v251_v13, %v250_v61  ;;  %v259_v1 = vadd.f32 %v258_v15, %v257_v62 }
  0x4f   : > { %v265_v2 = vrot.slane %v264_v16, 1  ;;  %v272_v3 = vrot.slane %v271_v17, 1  ;;  %v279_v4 = vrot.slane %v278_v18, 1  ;;  %v286_v5 = vrot.slane %v285_v19, 1 }
  0x50   : > { %v288_v6 = vmul.f32 %v238_v20, %v2075_v14  ;;  %v289_v10 = vmul.f32 %v245_v21, %v2075_v14  ;;  %v290_v30 = vmul.f32 %v252_v22, %v2075_v14  ;;  %v291_v31 = vmul.f32 %v259_v1, %v2075_v14 }
  0x51   : > { %v266_v32 = vadd.f32 %v265_v2, %v264_v16  ;;  %v273_v33 = vadd.f32 %v272_v3, %v271_v17  ;;  %v280_v34 = vadd.f32 %v279_v4, %v278_v18  ;;  %v287_v35 = vadd.f32 %v286_v5, %v285_v19 }
  0x52   : > { %v296_v36 = vadd.f32 1e-05, %v288_v6  ;;  %v2137_v37 = vadd.f32 1e-05, %v289_v10  ;;  %v2139_v38 = vadd.f32 1e-05, %v290_v30 }
  0x53   : > { %v292_v39 = vmul.f32 %v266_v32, %v2075_v14  ;;  %v293_v40 = vmul.f32 %v273_v33, %v2075_v14  ;;  %v294_v41 = vmul.f32 %v280_v34, %v2075_v14  ;;  %v295_v42 = vmul.f32 %v287_v35, %v2075_v14 }
  0x54   : > { %v2145_v43 = vadd.f32 1e-05, %v291_v31  ;;  %1657 = vrsqrt.f32 %v296_v36  ;;  %vm310_vm2 = vweird.f32 %v296_v36  ;;  %vm320_vm3 = vweird.f32 %v2137_v37 }
  0x55   : > { %v2147_v44 = vadd.f32 1e-05, %v292_v39  ;;  %v2149_v45 = vadd.f32 1e-05, %v293_v40  ;;  %1659 = vrsqrt.f32 %v2137_v37  ;;  %v2152_v46 = vadd.f32 1e-05, %v294_v41 }
  0x56   : > { %1661 = vrsqrt.f32 %v2139_v38  ;;  %v2155_v47 = vadd.f32 1e-05, %v295_v42  ;;  %vm330_vm4 = vweird.f32 %v2139_v38  ;;  %vm340_vm5 = vweird.f32 %v2145_v43 }
  0x57   : > { %1663 = vrsqrt.f32 %v2145_v43  ;;  %vm350_vm6 = vweird.f32 %v2147_v44  ;;  %vm360_vm7 = vweird.f32 %v2149_v45  ;;  %vm370_vm10 = vweird.f32 %v2152_v46 }
  0x58   : > { %1665 = vrsqrt.f32 %v2147_v44 }
  0x59   : > { %1667 = vrsqrt.f32 %v2149_v45 }
  0x5a   : > { %v2160_v14 = vpop.eup %1657  ;;  %1669 = vrsqrt.f32 %v2152_v46 }
  0x5b   : > { %v2163_v48 = vpop.eup %1659  ;;  %v305_v49 = vmul.f32 %v2160_v14, %v296_v36  ;;  %1671 = vrsqrt.f32 %v2155_v47  ;;  %vm311_vm8 = vweird.f32 %v2160_v14 }
  0x5c   : > { %v2169_v50 = vpop.eup %1661  ;;  %v315_v51 = vmul.f32 %v2163_v48, %v2137_v37  ;;  %vm321_vm9 = vweird.f32 %v2163_v48  ;;  %vm2209_vm1 = vmor %vm310_vm2, %vm311_vm8 }
  0x5d   : > { %v2176_v52 = vpop.eup %1663  ;;  %v306_v53 = vmul.f32 %v2160_v14, %v305_v49  ;;  %v325_v54 = vmul.f32 %v2169_v50, %v2139_v38  ;;  %vm331_vm11 = vweird.f32 %v2169_v50  ;;  %vm2219_vm15 = vmor %vm320_vm3, %vm321_vm9  ;;  %vm3181_vm9 = vcmask 1043456  }
  0x5e   : > { %v2184_v55 = vpop.eup %1665  ;;  %v316_v56 = vmul.f32 %v2163_v48, %v315_v51  ;;  %v335_v57 = vmul.f32 %v2176_v52, %v2145_v43  ;;  %vm341_vm12 = vweird.f32 %v2176_v52  ;;  %vm2228_vm2 = vmor %vm330_vm4, %vm331_vm11 }
  0x5f   : > { %v2191_v58 = vpop.eup %1667  ;;  %v307_v59 = vmul.f32 0.5, %v306_v53  ;;  %v326_v60 = vmul.f32 %v2169_v50, %v325_v54  ;;  %v345_v61 = vmul.f32 %v2184_v55, %v2147_v44  ;;  %vm351_vm13 = vweird.f32 %v2184_v55  ;;  %vm2242_vm3 = vmor %vm340_vm5, %vm341_vm12 }
  0x60   : > { %v1670_v62 = vpop.eup %1669  ;;  %v317_v63 = vmul.f32 0.5, %v316_v56  ;;  %v336_v7 = vmul.f32 %v2176_v52, %v335_v57  ;;  %v355_v8 = vmul.f32 %v2191_v58, %v2149_v45  ;;  %vm361_vm14 = vweird.f32 %v2191_v58  ;;  %vm2254_vm4 = vmor %vm350_vm6, %vm351_vm13 }
  0x61   : > { %v2202_v9 = vpop.eup %1671  ;;  %v308_v11 = vsub.f32 1.5, %v307_v59  ;;  %v327_v12 = vmul.f32 0.5, %v326_v60  ;;  %v346_v13 = vmul.f32 %v2184_v55, %v345_v61  ;;  %v365_v15 = vmul.f32 %v1670_v62, %v2152_v46  ;;  %vm2267_vm5 = vmor %vm360_vm7, %vm361_vm14 }
  0x62   : > { %v318_v17 = vsub.f32 1.5, %v317_v63  ;;  %v337_v18 = vmul.f32 0.5, %v336_v7  ;;  %v356_v19 = vmul.f32 %v2191_v58, %v355_v8  ;;  %vm371_vm0 = vweird.f32 %v1670_v62  ;;  %vm3183_vm11 = vmmov %vm3181_vm9 }
  0x63   : > { %v309_v20 = vmul.f32 %v2160_v14, %v308_v11  ;;  %v328_v22 = vsub.f32 1.5, %v327_v12  ;;  %v347_v1 = vmul.f32 0.5, %v346_v13  ;;  %v366_v2 = vmul.f32 %v1670_v62, %v365_v15  ;;  %vm2279_vm8 = vmor %vm370_vm10, %vm371_vm0 }
  0x64   : > { %v319_v3 = vmul.f32 %v2163_v48, %v318_v17  ;;  %v338_v5 = vsub.f32 1.5, %v337_v18  ;;  %v357_v6 = vmul.f32 0.5, %v356_v19  ;;  %v375_v10 = vmul.f32 %v2202_v9, %v2155_v47  ;;  %vm3182_vm10 = vmmov %vm3181_vm9 }
  0x65   : > { %v313_v30 = vsel %vm2209_vm1, %v2160_v14, %v309_v20  ;;  %v329_v31 = vmul.f32 %v2169_v50, %v328_v22  ;;  %v348_v33 = vsub.f32 1.5, %v347_v1  ;;  %v367_v34 = vmul.f32 0.5, %v366_v2  ;;  %vm3184_vm12 = vmmov %vm3181_vm9 }
  0x66   : > { %v323_v35 = vsel %vm2219_vm15, %v2163_v48, %v319_v3  ;;  %v339_v36 = vmul.f32 %v2176_v52, %v338_v5  ;;  %v358_v38 = vsub.f32 1.5, %v357_v6  ;;  %v376_v39 = vmul.f32 %v2202_v9, %v375_v10  ;;  %vm3185_vm13 = vmmov %vm3181_vm9 }
  0x67   : > { %v333_v40 = vsel %vm2228_vm2, %v2169_v50, %v329_v31  ;;  %v349_v41 = vmul.f32 %v2184_v55, %v348_v33  ;;  %v368_v43 = vsub.f32 1.5, %v367_v34  ;;  %vm381_vm6 = vweird.f32 %v2202_v9  ;;  %vm3186_vm14 = vmmov %vm3181_vm9 }
  0x68   : > { %v343_v44 = vsel %vm2242_vm3, %v2176_v52, %v339_v36  ;;  %v359_v14 = vmul.f32 %v2191_v58, %v358_v38  ;;  %v377_v45 = vmul.f32 0.5, %v376_v39  ;;  %v2284_v49 = vmul.f32 %v313_v30, %v2086_v23  ;;  %vm3187_vm15 = vmmov %vm3181_vm9 }
  0x69   : > { %v353_v50 = vsel %vm2254_vm4, %v2184_v55, %v349_v41  ;;  %v369_v51 = vmul.f32 %v1670_v62, %v368_v43  ;;  %v2290_v52 = vmul.f32 %v323_v35, %v2089_v24  ;;  %v2296_v54 = vmul.f32 %v333_v40, %v2092_v25  ;;  %vm3188_vm1 = vmmov %vm3181_vm9 }
  0x6a   : > { %v363_v46 = vsel %vm2267_vm5, %v2191_v58, %v359_v14  ;;  %v378_v53 = vsub.f32 1.5, %v377_v45  ;;  %vm3178_vm0 = vweird.f32 %v2155_v47  ;;  %v2307_v24 = vmul.f32 %v343_v44, %v2095_v26  ;;  %vm3189_vm2 = vmmov %vm3188_vm1 }
  0x6b   : > { %v373_v23 = vsel %vm2279_vm8, %v1670_v62, %v369_v51  ;;  %vm2302_vm7 = vmor %vm3178_vm0, %vm381_vm6  ;;  %v2310_v55 = vmul.f32 %v353_v50, %v2098_v27  ;;  %v392_v57 = vmul.f32 0.5, %v2284_v49  ;;  %v2315_v58 = vmul.f32 %v363_v46, %v2101_v28 }
  0x6c   : > { %v379_v25 = vmul.f32 %v2202_v9, %v378_v53  ;;  %v2318_v59 = vmul.f32 %v373_v23, %v2104_v29  ;;  %v2321_v47 = vmul.f32 0.5, %v2290_v52  ;;  %vm3190_vm3 = vmmov %vm3188_vm1 }
  0x6d   : > { %v393_v60 = vmul.f32 %v392_v57, %v2284_v49  ;;  %v394_v26 = vmul.f32 %v392_v57, %v2290_v52  ;;  %v395_v27 = vmul.f32 %v392_v57, %v2296_v54  ;;  %v396_v61 = vmul.f32 %v392_v57, %v2307_v24  ;;  %vm3191_vm4 = vmmov %vm3188_vm1 }
  0x6e   : > { %v383_v62 = vsel %vm2302_vm7, %v2202_v9, %v379_v25  ;;  %v397_v28 = vmul.f32 %v392_v57, %v2310_v55  ;;  %v398_v29 = vmul.f32 %v392_v57, %v2315_v58  ;;  %v399_v63 = vmul.f32 %v392_v57, %v2318_v59  ;;  %vm3192_vm5 = vmmov %vm3188_vm1 }
  0x6f   : > { %v2334_v7 = vmul.f32 %v383_v62, %v2107_v0  ;;  %v401_v8 = vsel %vm3181_vm9, %v393_v60, 0.0  ;;  %v408_v11 = vsel %vm3182_vm10, %v394_v26, 0.0  ;;  %v415_v12 = vsel %vm3183_vm11, %v395_v27, 0.0  ;;  %vm3193_vm6 = vmmov %vm3188_vm1 }
  0x70   : > { %v402_v13 = vrot.slane %v401_v8, 4  ;;  %v409_v15 = vrot.slane %v408_v11, 4  ;;  %v416_v16 = vrot.slane %v415_v12, 4  ;;  %v422_v9 = vsel %vm3184_vm12, %v396_v61, 0.0  ;;  %vm3194_vm8 = vmmov %vm3188_vm1 }
  0x71   : > { %v400_v17 = vmul.f32 %v392_v57, %v2334_v7  ;;  %v423_v18 = vrot.slane %v422_v9, 4  ;;  %v429_v19 = vsel %vm3185_vm13, %v397_v28, 0.0  ;;  %v436_v20 = vsel %vm3186_vm14, %v398_v29, 0.0  ;;  %vm3195_vm0 = vmmov %vm3188_vm1 }
  0x72   : > { %v403_v0 = vadd.f32 %v402_v13, %v401_v8  ;;  %v410_v21 = vadd.f32 %v409_v15, %v408_v11  ;;  %v417_v22 = vadd.f32 %v416_v16, %v415_v12  ;;  %v430_v1 = vrot.slane %v429_v19, 4  ;;  %vm3196_vm7 = vmmov %vm3195_vm0 }
  0x73   : > { %v424_v2 = vadd.f32 %v423_v18, %v422_v9  ;;  %v437_v3 = vrot.slane %v436_v20, 4  ;;  %v443_v4 = vsel %vm3187_vm15, %v399_v63, 0.0  ;;  %v450_v5 = vsel %vm3188_vm1, %v400_v17, 0.0  ;;  %vm3197_vm9 = vmmov %vm3195_vm0 }
  0x74   : > { %v404_v6 = vrot.slane %v403_v0, 2  ;;  %v411_v10 = vrot.slane %v410_v21, 2  ;;  %v418_v30 = vrot.slane %v417_v22, 2  ;;  %v431_v31 = vadd.f32 %v430_v1, %v429_v19  ;;  %vm3198_vm10 = vmmov %vm3195_vm0 }
  0x75   : > { %v425_v32 = vrot.slane %v424_v2, 2  ;;  %v438_v33 = vadd.f32 %v437_v3, %v436_v20  ;;  %v444_v34 = vrot.slane %v443_v4, 4  ;;  %v451_v35 = vrot.slane %v450_v5, 4  ;;  %vm3199_vm11 = vmmov %vm3195_vm0 }
  0x76   : > { %v405_v36 = vadd.f32 %v404_v6, %v403_v0  ;;  %v412_v37 = vadd.f32 %v411_v10, %v410_v21  ;;  %v419_v38 = vadd.f32 %v418_v30, %v417_v22  ;;  %v432_v39 = vrot.slane %v431_v31, 2  ;;  %vm3200_vm12 = vmmov %vm3195_vm0 }
  0x77   : > { %v426_v40 = vadd.f32 %v425_v32, %v424_v2  ;;  %v439_v41 = vrot.slane %v438_v33, 2  ;;  %v445_v42 = vadd.f32 %v444_v34, %v443_v4  ;;  %v452_v43 = vadd.f32 %v451_v35, %v450_v5  ;;  %vm3201_vm13 = vmmov %vm3195_vm0 }
  0x78   : > { %v406_v44 = vrot.slane %v405_v36, 1  ;;  %v413_v14 = vrot.slane %v412_v37, 1  ;;  %v420_v48 = vrot.slane %v419_v38, 1  ;;  %v433_v45 = vadd.f32 %v432_v39, %v431_v31  ;;  %vm3202_vm14 = vmmov %vm3195_vm0 }
  0x79   : > { %v427_v50 = vrot.slane %v426_v40, 1  ;;  %v440_v51 = vadd.f32 %v439_v41, %v438_v33  ;;  %v446_v46 = vrot.slane %v445_v42, 2  ;;  %v453_v53 = vrot.slane %v452_v43, 2  ;;  %vm3203_vm15 = vmmov %vm3195_vm0 }
  0x7a   : > { %v407_v23 = vadd.f32 %v406_v44, %v405_v36  ;;  %v414_v56 = vadd.f32 %v413_v14, %v412_v37  ;;  %v421_v57 = vadd.f32 %v420_v48, %v419_v38  ;;  %v434_v25 = vrot.slane %v433_v45, 1  ;;  %vm3204_vm1 = vmmov %vm3195_vm0 }
  0x7b   : > { %v428_v60 = vadd.f32 %v427_v50, %v426_v40  ;;  %v441_v26 = vrot.slane %v440_v51, 1  ;;  %v447_v27 = vadd.f32 %v446_v46, %v445_v42  ;;  %v454_v61 = vadd.f32 %v453_v53, %v452_v43 }
  0x7c   : > { %v435_v62 = vadd.f32 %v434_v25, %v433_v45  ;;  %v530_v28 = vmul.f32 %v2321_v47, %v2284_v49  ;;  %v531_v29 = vmul.f32 %v2321_v47, %v2290_v52  ;;  %v532_v63 = vmul.f32 %v2321_v47, %v2296_v54 }
  0x7d   : > { %v442_v8 = vadd.f32 %v441_v26, %v440_v51  ;;  %v448_v11 = vrot.slane %v447_v27, 1  ;;  %v455_v12 = vrot.slane %v454_v61, 1  ;;  %v533_v13 = vmul.f32 %v2321_v47, %v2307_v24 }
  0x7e   : > { %v457_v15 = vmax.f32 %v407_v23, %v435_v62  ;;  %v534_v16 = vmul.f32 %v2321_v47, %v2310_v55  ;;  %v535_v19 = vmul.f32 %v2321_v47, %v2315_v58  ;;  %v538_v20 = vsel %vm3189_vm2, %v530_v28, 0.0  ;;  %vm3205_vm2 = vmmov %vm3195_vm0 }
  0x7f   : > { %v449_v9 = vadd.f32 %v448_v11, %v447_v27  ;;  %v456_v17 = vadd.f32 %v455_v12, %v454_v61  ;;  %v458_v18 = vmax.f32 %v414_v56, %v442_v8  ;;  %v545_v0 = vsel %vm3190_vm3, %v531_v29, 0.0  ;;  %vm3206_vm3 = vmmov %vm3195_vm0 }
  0x80   : > { %v552_v21 = vsel %vm3191_vm4, %v532_v63, 0.0  ;;  %v559_v22 = vsel %vm3192_vm5, %v533_v13, 0.0  ;;  %v539_v4 = vrot.slane %v538_v20, 4  ;;  %v546_v5 = vrot.slane %v545_v0, 4  ;;  %vm3207_vm4 = vmmov %vm3195_vm0 }
  0x81   : > { %v459_v1 = vmax.f32 %v421_v57, %v449_v9  ;;  %v460_v2 = vmax.f32 %v428_v60, %v456_v17  ;;  %v461_v3 = vmax.f32 %v457_v15, %v458_v18  ;;  %v553_v6 = vrot.slane %v552_v21, 4  ;;  %vm3208_vm5 = vmmov %vm3195_vm0 }
  0x82   : > { %v560_v10 = vrot.slane %v559_v22, 4  ;;  %v566_v30 = vsel %vm3193_vm6, %v534_v16, 0.0  ;;  %v540_v32 = vadd.f32 %v539_v4, %v538_v20  ;;  %v573_v34 = vsel %vm3194_vm8, %v535_v19, 0.0  ;;  %vm3209_vm6 = vmmov %vm3195_vm0 }
  0x83   : > { %v462_v31 = vmax.f32 %v459_v1, %v460_v2  ;;  %v567_v33 = vrot.slane %v566_v30, 4  ;;  %v547_v35 = vadd.f32 %v546_v5, %v545_v0  ;;  %v554_v36 = vadd.f32 %v553_v6, %v552_v21  ;;  %vm3210_vm8 = vmmov %vm3195_vm0 }
  0x84   : > { %v561_v37 = vadd.f32 %v560_v10, %v559_v22  ;;  %v574_v38 = vrot.slane %v573_v34, 4  ;;  %v536_v40 = vmul.f32 %v2321_v47, %v2318_v59  ;;  %v537_v41 = vmul.f32 %v2321_v47, %v2334_v7 }
  0x85   : > { %v463_v39 = vmax.f32 %v461_v3, %v462_v31  ;;  %v541_v42 = vrot.slane %v540_v32, 2  ;;  %v548_v43 = vrot.slane %v547_v35, 2  ;;  %v555_v44 = vrot.slane %v554_v36, 2 }
  0x86   : > { %v562_v14 = vrot.slane %v561_v37, 2  ;;  %v568_v48 = vadd.f32 %v567_v33, %v566_v30  ;;  %v575_v27 = vadd.f32 %v574_v38, %v573_v34  ;;  %v580_v13 = vsel %vm3195_vm0, %v536_v40, 0.0 }
  0x87   : > { %v464_v45 = vsub.f32 %v407_v23, %v463_v39  ;;  %v465_v50 = vsub.f32 %v414_v56, %v463_v39  ;;  %v466_v51 = vsub.f32 %v421_v57, %v463_v39  ;;  %v467_v46 = vsub.f32 %v428_v60, %v463_v39 }
  0x88   : > { %v468_v53 = vsub.f32 %v435_v62, %v463_v39  ;;  %v469_v25 = vsub.f32 %v442_v8, %v463_v39  ;;  %v470_v26 = vsub.f32 %v449_v9, %v463_v39  ;;  %v542_v63 = vadd.f32 %v541_v42, %v540_v32 }
  0x89   : > { %v472_v61 = vmul.f32 1.442695, %v464_v45  ;;  %v474_v28 = vmul.f32 1.442695, %v465_v50  ;;  %v476_v29 = vmul.f32 1.442695, %v466_v51  ;;  %v471_v11 = vsub.f32 %v456_v17, %v463_v39 }
  0x8a   : > { %v478_v12 = vmul.f32 1.442695, %v467_v46  ;;  %v549_v47 = vadd.f32 %v548_v43, %v547_v35  ;;  %v480_v15 = vmul.f32 1.442695, %v468_v53  ;;  %v482_v16 = vmul.f32 1.442695, %v469_v25 }
  0x8b   : > { %1673 = vpow2.f32 %v472_v61  ;;  %v543_v23 = vrot.slane %v542_v63, 1  ;;  %v556_v57 = vadd.f32 %v555_v44, %v554_v36  ;;  %v563_v60 = vadd.f32 %v562_v14, %v561_v37 }
  0x8c   : > { %1675 = vpow2.f32 %v474_v28  ;;  %v550_v56 = vrot.slane %v549_v47, 1  ;;  %v484_v62 = vmul.f32 1.442695, %v470_v26  ;;  %v569_v8 = vrot.slane %v568_v48, 2 }
  0x8d   : > { %1677 = vpow2.f32 %v476_v29  ;;  %v576_v9 = vrot.slane %v575_v27, 2  ;;  %v486_v18 = vmul.f32 1.442695, %v471_v11  ;;  %v557_v19 = vrot.slane %v556_v57, 1 }
  0x8e   : > { %1679 = vpow2.f32 %v478_v12  ;;  %v564_v17 = vrot.slane %v563_v60, 1  ;;  %v570_v20 = vadd.f32 %v569_v8, %v568_v48  ;;  %v581_v21 = vrot.slane %v580_v13, 4 }
  0x8f   : > { %1681 = vpow2.f32 %v480_v15  ;;  %v577_v0 = vadd.f32 %v576_v9, %v575_v27  ;;  %v2368_v22 = vadd.f32 %v543_v23, %v542_v63  ;;  %v2370_v1 = vadd.f32 %v550_v56, %v549_v47 }
  0x90   : > { %1683 = vpow2.f32 %v482_v16  ;;  %v587_v2 = vsel %vm3196_vm7, %v537_v41, 0.0  ;;  %v2375_v4 = vadd.f32 %v557_v19, %v556_v57  ;;  %v571_v5 = vrot.slane %v570_v20, 1  ;;  %vm3211_vm7 = vmmov %vm3195_vm0 }
  0x91   : > { %v2373_v3 = vpop.eup %1673  ;;  %v578_v6 = vrot.slane %v577_v0, 1  ;;  %v582_v10 = vadd.f32 %v581_v21, %v580_v13  ;;  %1685 = vpow2.f32 %v484_v62  ;;  %v2379_v31 = vadd.f32 %v564_v17, %v563_v60 }
  0x92   : > { %v2377_v30 = vpop.eup %1675  ;;  %v588_v32 = vrot.slane %v587_v2, 4  ;;  %v2382_v33 = vmul.f32 0.5, %v2296_v54  ;;  %v2388_v36 = vadd.f32 %v571_v5, %v570_v20  ;;  %1687 = vpow2.f32 %v486_v18 }
  0x93   : > { %v2384_v34 = vpop.eup %1677  ;;  %v488_v35 = vadd.f32 %v2377_v30, %v2373_v3  ;;  %v2390_v37 = vadd.f32 %v578_v6, %v577_v0  ;;  %v583_v38 = vrot.slane %v582_v10, 2 }
  0x94   : > { %v2392_v39 = vpop.eup %1679  ;;  %v589_v40 = vadd.f32 %v588_v32, %v587_v2  ;;  %v668_v41 = vmul.f32 %v2382_v33, %v2284_v49  ;;  %v669_v42 = vmul.f32 %v2382_v33, %v2290_v52  ;;  %v594_v48 = vmax.f32 %v2368_v22, %v2388_v36 }
  0x95   : > { %v2398_v43 = vpop.eup %1681  ;;  %v489_v44 = vadd.f32 %v2384_v34, %v488_v35  ;;  %v584_v14 = vadd.f32 %v583_v38, %v582_v10  ;;  %v595_v45 = vmax.f32 %v2370_v1, %v2390_v37  ;;  %v670_v46 = vmul.f32 %v2382_v33, %v2296_v54 }
  0x96   : > { %v2405_v50 = vpop.eup %1683  ;;  %v590_v51 = vrot.slane %v589_v40, 2  ;;  %v671_v53 = vmul.f32 %v2382_v33, %v2307_v24  ;;  %v672_v25 = vmul.f32 %v2382_v33, %v2310_v55  ;;  %v673_v28 = vmul.f32 %v2382_v33, %v2315_v58 }
  0x97   : > { %v490_v26 = vadd.f32 %v2392_v39, %v489_v44  ;;  %v585_v27 = vrot.slane %v584_v14, 1  ;;  %v598_v61 = vmax.f32 %v594_v48, %v595_v45  ;;  %v2416_v29 = vpop.eup %1685  ;;  %v674_v11 = vmul.f32 %v2382_v33, %v2318_v59 }
  0x98   : > { %v591_v63 = vadd.f32 %v590_v51, %v589_v40  ;;  %v676_v12 = vsel %vm3197_vm9, %v668_v41, 0.0  ;;  %v683_v47 = vsel %vm3198_vm10, %v669_v42, 0.0  ;;  %v2425_v56 = vpop.eup %1687  ;;  %v690_v60 = vsel %vm3199_vm11, %v670_v46, 0.0  ;;  %vm3212_vm9 = vmmov %vm3195_vm0 }
  0x99   : > { %v491_v13 = vadd.f32 %v2398_v43, %v490_v26  ;;  %v2423_v15 = vadd.f32 %v585_v27, %v584_v14  ;;  %v677_v16 = vrot.slane %v676_v12, 4  ;;  %v684_v23 = vrot.slane %v683_v47, 4  ;;  %vm3213_vm10 = vmmov %vm3195_vm0 }
  0x9a   : > { %v592_v57 = vrot.slane %v591_v63, 1  ;;  %v697_v62 = vsel %vm3200_vm12, %v671_v53, 0.0  ;;  %v704_v8 = vsel %vm3201_vm13, %v672_v25, 0.0  ;;  %v691_v0 = vrot.slane %v690_v60, 4  ;;  %vm3214_vm11 = vmmov %vm3195_vm0 }
  0x9b   : > { %v492_v9 = vadd.f32 %v2405_v50, %v491_v13  ;;  %v596_v18 = vmax.f32 %v2375_v4, %v2423_v15  ;;  %v678_v19 = vadd.f32 %v677_v16, %v676_v12  ;;  %v685_v17 = vadd.f32 %v684_v23, %v683_v47  ;;  %vm3215_vm12 = vmmov %vm3195_vm0 }
  0x9c   : > { %v2433_v20 = vadd.f32 %v592_v57, %v591_v63  ;;  %v698_v21 = vrot.slane %v697_v62, 4  ;;  %v705_v2 = vrot.slane %v704_v8, 4  ;;  %v711_v32 = vsel %vm3202_vm14, %v673_v28, 0.0  ;;  %vm3216_vm13 = vmmov %vm3195_vm0 }
  0x9d   : > { %v493_v5 = vadd.f32 %v2416_v29, %v492_v9  ;;  %v679_v6 = vrot.slane %v678_v19, 2  ;;  %v686_v10 = vrot.slane %v685_v17, 2  ;;  %v692_v38 = vadd.f32 %v691_v0, %v690_v60  ;;  %vm3217_vm14 = vmmov %vm3195_vm0 }
  0x9e   : > { %v597_v35 = vmax.f32 %v2379_v31, %v2433_v20  ;;  %v699_v40 = vadd.f32 %v698_v21, %v697_v62  ;;  %v706_v41 = vadd.f32 %v705_v2, %v704_v8  ;;  %v712_v48 = vrot.slane %v711_v32, 4 }
  0x9f   : > { %v494_v42 = vadd.f32 %v2425_v56, %v493_v5  ;;  %v680_v44 = vadd.f32 %v679_v6, %v678_v19  ;;  %v687_v14 = vadd.f32 %v686_v10, %v685_v17  ;;  %v693_v51 = vrot.slane %v692_v38, 2 }
  0xa0   : > { %v599_v45 = vmax.f32 %v596_v18, %v597_v35  ;;  %v700_v46 = vrot.slane %v699_v40, 2  ;;  %v707_v53 = vrot.slane %v706_v41, 2  ;;  %v713_v27 = vadd.f32 %v712_v48, %v711_v32 }
  0xa1   : > { %1689 = vrcp.f32 %v494_v42  ;;  %v681_v25 = vrot.slane %v680_v44, 1  ;;  %v688_v26 = vrot.slane %v687_v14, 1  ;;  %v2442_v63 = vmul.f32 %v2382_v33, %v2334_v7 }
  0xa2   : > { %v600_v28 = vmax.f32 %v598_v61, %v599_v45  ;;  %v694_v12 = vadd.f32 %v693_v51, %v692_v38  ;;  %v2444_v47 = vadd.f32 %v700_v46, %v699_v40  ;;  %v708_v13 = vadd.f32 %v707_v53, %v706_v41 }
  0xa3   : > { %v714_v16 = vrot.slane %v713_v27, 2  ;;  %v2451_v61 = vadd.f32 %v681_v25, %v680_v44  ;;  %v2453_v9 = vadd.f32 %v688_v26, %v687_v14  ;;  %v718_v33 = vsel %vm3203_vm15, %v674_v11, 0.0  ;;  %vm3218_vm15 = vmmov %vm3195_vm0 }
  0xa4   : > { %v601_v23 = vsub.f32 %v2368_v22, %v600_v28  ;;  %v602_v57 = vsub.f32 %v2370_v1, %v600_v28  ;;  %v603_v60 = vsub.f32 %v2375_v4, %v600_v28  ;;  %v604_v62 = vsub.f32 %v2379_v31, %v600_v28 }
  0xa5   : > { %v605_v8 = vsub.f32 %v2388_v36, %v600_v28  ;;  %v606_v18 = vsub.f32 %v2390_v37, %v600_v28  ;;  %v607_v19 = vsub.f32 %v2423_v15, %v600_v28  ;;  %v608_v22 = vsub.f32 %v2433_v20, %v600_v28 }
  0xa6   : > { %v609_v17 = vmul.f32 1.442695, %v601_v23  ;;  %v611_v0 = vmul.f32 1.442695, %v602_v57  ;;  %v613_v4 = vmul.f32 1.442695, %v603_v60  ;;  %v715_v31 = vadd.f32 %v714_v16, %v713_v27 }
  0xa7   : > { %v1690_v1 = vpop.eup %1689  ;;  %v615_v21 = vmul.f32 1.442695, %v604_v62  ;;  %v617_v38 = vmul.f32 1.442695, %v605_v8  ;;  %v619_v44 = vmul.f32 1.442695, %v606_v18 }
  0xa8   : > { %v496_v36 = vmul.f32 %v1690_v1, %v2373_v3  ;;  %v497_v2 = vmul.f32 %v1690_v1, %v2377_v30  ;;  %v498_v5 = vmul.f32 %v1690_v1, %v2384_v34  ;;  %v499_v11 = vmul.f32 %v1690_v1, %v2392_v39 }
  0xa9   : > { %v500_v37 = vmul.f32 %v1690_v1, %v2398_v43  ;;  %v501_v15 = vmul.f32 %v1690_v1, %v2405_v50  ;;  %v502_v20 = vmul.f32 %v1690_v1, %v2416_v29  ;;  %v503_v6 = vmul.f32 %v1690_v1, %v2425_v56 }
  0xaa   : > { %v504_v10 = vmul.f32 %v496_v36, %v2284_v49  ;;  %v505_v32 = vmul.f32 %v497_v2, %v2290_v52  ;;  %v506_v3 = vmul.f32 %v498_v5, %v2296_v54  ;;  %v507_v30 = vmul.f32 %v499_v11, %v2307_v24 }
  0xab   : > { %v508_v34 = vmul.f32 %v500_v37, %v2310_v55  ;;  %v509_v39 = vmul.f32 %v501_v15, %v2315_v58  ;;  %v510_v43 = vmul.f32 %v502_v20, %v2318_v59  ;;  %v511_v50 = vmul.f32 %v503_v6, %v2334_v7 }
  0xac   : > { %v512_v29 = vsel %vm3204_vm1, %v504_v10, 0.0  ;;  %v513_v56 = vsel %vm3205_vm2, %v505_v32, 0.0  ;;  %v515_v35 = vsel %vm3206_vm3, %v506_v3, 0.0  ;;  %v517_v41 = vsel %vm3207_vm4, %v507_v30, 0.0  ;;  %vm3219_vm1 = vmmov %vm3195_vm0 }
  0xad   : > { %v514_v40 = vadd.f32 %v513_v56, %v512_v29  ;;  %v519_v42 = vsel %vm3208_vm5, %v508_v34, 0.0  ;;  %v521_v14 = vsel %vm3209_vm6, %v509_v39, 0.0  ;;  %v523_v48 = vsel %vm3210_vm8, %v510_v43, 0.0  ;;  %vm3220_vm2 = vmmov %vm3195_vm0 }
  0xae   : > { %v525_v45 = vsel %vm3195_vm0, %v511_v50, 0.0  ;;  %1691 = vpow2.f32 %v609_v17  ;;  %v621_v46 = vmul.f32 1.442695, %v607_v19  ;;  %v695_v53 = vrot.slane %v694_v12, 1  ;;  %vm3221_vm3 = vmmov %vm3195_vm0 }
  0xaf   : > { %v516_v51 = vadd.f32 %v515_v35, %v514_v40  ;;  %1693 = vpow2.f32 %v611_v0  ;;  %v709_v25 = vrot.slane %v708_v13, 1  ;;  %v716_v26 = vrot.slane %v715_v31, 1  ;;  %vm3222_vm4 = vmmov %vm3195_vm0 }
  0xb0   : > { %1695 = vpow2.f32 %v613_v4  ;;  %v719_v27 = vrot.slane %v718_v33, 4  ;;  %v623_v16 = vmul.f32 1.442695, %v608_v22  ;;  %v702_v23 = vrot.slane %v2444_v47, 1  ;;  %vm3223_vm5 = vmmov %vm3195_vm0 }
  0xb1   : > { %v518_v28 = vadd.f32 %v517_v41, %v516_v51  ;;  %1697 = vpow2.f32 %v615_v21  ;;  %v2484_v57 = vadd.f32 %v695_v53, %v694_v12  ;;  %v2486_v60 = vadd.f32 %v709_v25, %v708_v13  ;;  %v1817_v41 = vld [vmem:[%s2029_s25] sm:$0xf]  ;;  %vm3224_vm6 = vmmov %vm3195_vm0 }
  0xb2   : > { %v2488_v62 = vadd.f32 %v716_v26, %v715_v31  ;;  %v720_v8 = vadd.f32 %v719_v27, %v718_v33  ;;  %1699 = vpow2.f32 %v617_v38  ;;  %v725_v19 = vsel %vm3211_vm7, %v2442_v63, 0.0  ;;  %vm3225_vm8 = vmmov %vm3195_vm0 }
  0xb3   : > { %v520_v18 = vadd.f32 %v519_v42, %v518_v28  ;;  %v2493_v17 = vmul.f32 0.5, %v2307_v24  ;;  %1701 = vpow2.f32 %v619_v44  ;;  %v726_v0 = vrot.slane %v725_v19, 4  ;;  %vm3226_vm7 = vmmov %vm3195_vm0 }
  0xb4   : > { %v2495_v1 = vpop.eup %1691  ;;  %v721_v22 = vrot.slane %v720_v8, 2  ;;  %v732_v12 = vmax.f32 %v2451_v61, %v2486_v60  ;;  %1703 = vpow2.f32 %v621_v46  ;;  %v2502_v33 = vadd.f32 %v702_v23, %v2444_v47 }
  0xb5   : > { %v2499_v13 = vpop.eup %1693  ;;  %v522_v4 = vadd.f32 %v521_v14, %v520_v18  ;;  %v733_v63 = vmax.f32 %v2453_v9, %v2488_v62  ;;  %v727_v2 = vadd.f32 %v726_v0, %v725_v19  ;;  %v806_v5 = vmul.f32 %v2493_v17, %v2284_v49 }
  0xb6   : > { %v2506_v21 = vpop.eup %1695  ;;  %v625_v31 = vadd.f32 %v2499_v13, %v2495_v1  ;;  %v722_v36 = vadd.f32 %v721_v22, %v720_v8  ;;  %1705 = vpow2.f32 %v623_v16  ;;  %v807_v47 = vmul.f32 %v2493_v17, %v2290_v52 }
  0xb7   : > { %v2512_v11 = vpop.eup %1697  ;;  %v524_v37 = vadd.f32 %v523_v48, %v522_v4  ;;  %v808_v15 = vmul.f32 %v2493_v17, %v2296_v54  ;;  %v728_v10 = vrot.slane %v727_v2, 2  ;;  %v736_v32 = vmax.f32 %v732_v12, %v733_v63 }
  0xb8   : > { %v626_v20 = vadd.f32 %v2506_v21, %v625_v31  ;;  %v723_v6 = vrot.slane %v722_v36, 1  ;;  %v2519_v3 = vpop.eup %1699  ;;  %v809_v34 = vmul.f32 %v2493_v17, %v2307_v24  ;;  %v810_v39 = vmul.f32 %v2493_v17, %v2310_v55 }
  0xb9   : > { %v526_v30 = vadd.f32 %v525_v45, %v524_v37  ;;  %v811_v43 = vmul.f32 %v2493_v17, %v2315_v58  ;;  %v2527_v50 = vpop.eup %1701  ;;  %v729_v35 = vadd.f32 %v728_v10, %v727_v2  ;;  %v814_v38 = vsel %vm3212_vm9, %v806_v5, 0.0  ;;  %vm3227_vm9 = vmmov %vm3195_vm0 }
  0xba   : > { %v627_v29 = vadd.f32 %v2512_v11, %v626_v20  ;;  %v2530_v56 = vadd.f32 %v723_v6, %v722_v36  ;;  %v2533_v40 = vpop.eup %1703  ;;  %v815_v44 = vrot.slane %v814_v38, 4  ;;  %v821_v14 = vsel %vm3213_vm10, %v807_v47, 0.0  ;;  %vm3228_vm10 = vmmov %vm3195_vm0 }
  0xbb   : > { %v527_v42 = vadd.f32 %v1817_v41, %v526_v30  ;;  %v828_v48 = vsel %vm3214_vm11, %v808_v15, 0.0  ;;  %v730_v51 = vrot.slane %v729_v35, 1  ;;  %v822_v53 = vrot.slane %v821_v14, 4  ;;  %vm3229_vm11 = vmmov %vm3195_vm0 }
  0xbc   : > { %v628_v45 = vadd.f32 %v2519_v3, %v627_v29  ;;  %v734_v46 = vmax.f32 %v2484_v57, %v2530_v56  ;;  %v2541_v25 = vpop.eup %1705  ;;  %v816_v26 = vadd.f32 %v815_v44, %v814_v38  ;;  %v829_v27 = vrot.slane %v828_v48, 4 }
  0xbd   : > { %528 = vst [vmem:[%s2545_s17] sm:$0xf] %v527_v42  ;;  %v835_v28 = vsel %vm3215_vm12, %v809_v34, 0.0  ;;  %v842_v16 = vsel %vm3216_vm13, %v810_v39, 0.0  ;;  %v2551_v8 = vadd.f32 %v730_v51, %v729_v35  ;;  %v823_v18 = vadd.f32 %v822_v53, %v821_v14  ;;  %vm3230_vm12 = vmmov %vm3195_vm0 }
  0xbe   : > { %v629_v23 = vadd.f32 %v2527_v50, %v628_v45  ;;  %v836_v19 = vrot.slane %v835_v28, 4  ;;  %v817_v22 = vrot.slane %v816_v26, 2  ;;  %v830_v0 = vadd.f32 %v829_v27, %v828_v48  ;;  %vm3231_vm13 = vmmov %vm3195_vm0 }
  0xbf   : > { %v843_v12 = vrot.slane %v842_v16, 4  ;;  %v849_v4 = vsel %vm3217_vm14, %v811_v43, 0.0  ;;  %v735_v31 = vmax.f32 %v2502_v33, %v2551_v8  ;;  %v824_v36 = vrot.slane %v823_v18, 2  ;;  %vm3232_vm14 = vmmov %vm3195_vm0 }
  0xc0   : > { %v630_v63 = vadd.f32 %v2533_v40, %v629_v23  ;;  %v837_v2 = vadd.f32 %v836_v19, %v835_v28  ;;  %v818_v5 = vadd.f32 %v817_v22, %v816_v26  ;;  %v831_v37 = vrot.slane %v830_v0, 2 }
  0xc1   : > { %v844_v47 = vadd.f32 %v843_v12, %v842_v16  ;;  %v850_v15 = vrot.slane %v849_v4, 4  ;;  %v737_v6 = vmax.f32 %v734_v46, %v735_v31  ;;  %v825_v10 = vadd.f32 %v824_v36, %v823_v18 }
  0xc2   : > { %v631_v20 = vadd.f32 %v2541_v25, %v630_v63  ;;  %v838_v30 = vrot.slane %v837_v2, 2  ;;  %v2560_v34 = vmul.f32 %v2493_v17, %v2318_v59  ;;  %v819_v39 = vrot.slane %v818_v5, 1 }
  0xc3   : > { %v832_v43 = vadd.f32 %v831_v37, %v830_v0  ;;  %v845_v29 = vrot.slane %v844_v47, 2  ;;  %v738_v35 = vmax.f32 %v736_v32, %v737_v6  ;;  %v2564_v38 = vmul.f32 %v2493_v17, %v2334_v7 }
  0xc4   : > { %1707 = vrcp.f32 %v631_v20  ;;  %v851_v41 = vadd.f32 %v850_v15, %v849_v4  ;;  %v2566_v42 = vadd.f32 %v819_v39, %v818_v5  ;;  %v826_v44 = vrot.slane %v825_v10, 1 }
  0xc5   : > { %v833_v14 = vrot.slane %v832_v43, 1  ;;  %v2568_v48 = vadd.f32 %v838_v30, %v837_v2  ;;  %v739_v45 = vsub.f32 %v2451_v61, %v738_v35  ;;  %v740_v51 = vsub.f32 %v2453_v9, %v738_v35 }
  0xc6   : > { %v741_v46 = vsub.f32 %v2484_v57, %v738_v35  ;;  %v742_v53 = vsub.f32 %v2502_v33, %v738_v35  ;;  %v743_v32 = vsub.f32 %v2486_v60, %v738_v35  ;;  %v744_v17 = vsub.f32 %v2488_v62, %v738_v35 }
  0xc7   : > { %v745_v26 = vsub.f32 %v2530_v56, %v738_v35  ;;  %v846_v27 = vadd.f32 %v845_v29, %v844_v47  ;;  %v746_v28 = vsub.f32 %v2551_v8, %v738_v35  ;;  %v747_v16 = vmul.f32 1.442695, %v739_v45 }
  0xc8   : > { %v749_v23 = vmul.f32 1.442695, %v740_v51  ;;  %v852_v18 = vrot.slane %v851_v41, 2  ;;  %v751_v19 = vmul.f32 1.442695, %v741_v46  ;;  %v2578_v9 = vadd.f32 %v826_v44, %v825_v10 }
  0xc9   : > { %v753_v61 = vmul.f32 1.442695, %v742_v53  ;;  %v755_v22 = vmul.f32 1.442695, %v743_v32  ;;  %1709 = vpow2.f32 %v747_v16  ;;  %v757_v33 = vmul.f32 1.442695, %v744_v17 }
  0xca   : > { %v1708_v57 = vpop.eup %1707  ;;  %v759_v0 = vmul.f32 1.442695, %v745_v26  ;;  %v2580_v60 = vadd.f32 %v833_v14, %v832_v43  ;;  %v761_v37 = vmul.f32 1.442695, %v746_v28  ;;  %v840_v47 = vrot.slane %v2568_v48, 1 }
  0xcb   : > { %v633_v62 = vmul.f32 %v1708_v57, %v2495_v1  ;;  %v634_v56 = vmul.f32 %v1708_v57, %v2499_v13  ;;  %v635_v8 = vmul.f32 %v1708_v57, %v2506_v21  ;;  %v636_v12 = vmul.f32 %v1708_v57, %v2512_v11 }
  0xcc   : > { %v637_v4 = vmul.f32 %v1708_v57, %v2519_v3  ;;  %v638_v63 = vmul.f32 %v1708_v57, %v2527_v50  ;;  %v639_v31 = vmul.f32 %v1708_v57, %v2533_v40  ;;  %v640_v36 = vmul.f32 %v1708_v57, %v2541_v25 }
  0xcd   : > { %v641_v2 = vmul.f32 %v633_v62, %v2284_v49  ;;  %v642_v5 = vmul.f32 %v634_v56, %v2290_v52  ;;  %v643_v1 = vmul.f32 %v635_v8, %v2296_v54  ;;  %v644_v13 = vmul.f32 %v636_v12, %v2307_v24 }
  0xce   : > { %v645_v21 = vmul.f32 %v637_v4, %v2310_v55  ;;  %v646_v11 = vmul.f32 %v638_v63, %v2315_v58  ;;  %v647_v3 = vmul.f32 %v639_v31, %v2318_v59  ;;  %v648_v20 = vmul.f32 %v640_v36, %v2334_v7 }
  0xcf   : > { %v649_v50 = vsel %vm3218_vm15, %v641_v2, 0.0  ;;  %v650_v40 = vsel %vm3219_vm1, %v642_v5, 0.0  ;;  %v652_v25 = vsel %vm3220_vm2, %v643_v1, 0.0  ;;  %v2601_v15 = vpop.eup %1709  ;;  %v654_v10 = vsel %vm3221_vm3, %v644_v13, 0.0  ;;  %vm3233_vm15 = vmmov %vm3195_vm0 }
  0xd0   : > { %v651_v6 = vadd.f32 %v650_v40, %v649_v50  ;;  %v656_v30 = vsel %vm3222_vm4, %v645_v21, 0.0  ;;  %v658_v39 = vsel %vm3223_vm5, %v646_v11, 0.0  ;;  %v660_v43 = vsel %vm3224_vm6, %v647_v3, 0.0  ;;  %vm3234_vm1 = vmmov %vm3195_vm0 }
  0xd1   : > { %1711 = vpow2.f32 %v749_v23  ;;  %v847_v29 = vrot.slane %v846_v27, 1  ;;  %v853_v44 = vadd.f32 %v852_v18, %v851_v41  ;;  %v856_v14 = vsel %vm3225_vm8, %v2560_v34, 0.0  ;;  %vm3235_vm2 = vmmov %vm3195_vm0 }
  0xd2   : > { %v653_v35 = vadd.f32 %v652_v25, %v651_v6  ;;  %1713 = vpow2.f32 %v751_v19  ;;  %v857_v51 = vrot.slane %v856_v14, 4  ;;  %v863_v46 = vsel %vm3195_vm0, %v2564_v38, 0.0  ;;  %vm3236_vm3 = vmmov %vm3195_vm0 }
  0xd3   : > { %1715 = vpow2.f32 %v753_v61  ;;  %v2610_v45 = vadd.f32 %v847_v29, %v846_v27  ;;  %v662_v32 = vsel %vm3226_vm7, %v648_v20, 0.0  ;;  %v854_v17 = vrot.slane %v853_v44, 1  ;;  %vm3237_vm4 = vmmov %vm3195_vm0 }
  0xd4   : > { %v655_v53 = vadd.f32 %v654_v10, %v653_v35  ;;  %v864_v26 = vrot.slane %v863_v46, 4  ;;  %1717 = vpow2.f32 %v755_v22  ;;  %v2616_v28 = vadd.f32 %v840_v47, %v2568_v48  ;;  %vm3238_vm5 = vmmov %vm3195_vm0 }
  0xd5   : > { %v858_v41 = vadd.f32 %v857_v51, %v856_v14  ;;  %v2619_v16 = vmul.f32 0.5, %v2310_v55  ;;  %1719 = vpow2.f32 %v757_v33  ;;  %v2621_v27 = vadd.f32 %v854_v17, %v853_v44  ;;  %vm3239_vm6 = vmmov %vm3195_vm0 }
  0xd6   : > { %v657_v34 = vadd.f32 %v656_v30, %v655_v53  ;;  %v865_v23 = vadd.f32 %v864_v26, %v863_v46  ;;  %1721 = vpow2.f32 %v759_v0  ;;  %v870_v19 = vmax.f32 %v2566_v42, %v2610_v45  ;;  %v1818_v30 = vld [vmem:[%s2029_s25 + $0x4] sm:$0xf]  ;;  %vm3240_vm8 = vmmov %vm3195_vm0 }
  0xd7   : > { %v2623_v18 = vpop.eup %1711  ;;  %v859_v38 = vrot.slane %v858_v41, 2  ;;  %v944_v48 = vmul.f32 %v2619_v16, %v2284_v49  ;;  %v871_v62 = vmax.f32 %v2578_v9, %v2621_v27  ;;  %1723 = vpow2.f32 %v761_v37  ;;  %vm3241_vm7 = vmmov %vm3195_vm0 }
  0xd8   : > { %v2629_v61 = vpop.eup %1713  ;;  %v659_v22 = vadd.f32 %v658_v39, %v657_v34  ;;  %v763_v57 = vadd.f32 %v2623_v18, %v2601_v15  ;;  %v866_v33 = vrot.slane %v865_v23, 2  ;;  %v945_v8 = vmul.f32 %v2619_v16, %v2290_v52 }
  0xd9   : > { %v2635_v56 = vpop.eup %1715  ;;  %v860_v0 = vadd.f32 %v859_v38, %v858_v41  ;;  %v946_v12 = vmul.f32 %v2619_v16, %v2296_v54  ;;  %v947_v36 = vmul.f32 %v2619_v16, %v2307_v24  ;;  %v874_v1 = vmax.f32 %v870_v19, %v871_v62 }
  0xda   : > { %v661_v4 = vadd.f32 %v660_v43, %v659_v22  ;;  %v764_v63 = vadd.f32 %v2629_v61, %v763_v57  ;;  %v867_v31 = vadd.f32 %v866_v33, %v865_v23  ;;  %v2644_v2 = vpop.eup %1717  ;;  %v948_v13 = vmul.f32 %v2619_v16, %v2310_v55 }
  0xdb   : > { %v861_v5 = vrot.slane %v860_v0, 1  ;;  %v949_v21 = vmul.f32 %v2619_v16, %v2315_v58  ;;  %v2650_v11 = vpop.eup %1719  ;;  %v952_v40 = vsel %vm3227_vm9, %v944_v48, 0.0  ;;  %v959_v6 = vsel %vm3228_vm10, %v945_v8, 0.0  ;;  %vm3242_vm9 = vmmov %vm3195_vm0 }
  0xdc   : > { %v663_v3 = vadd.f32 %v662_v32, %v661_v4  ;;  %v765_v37 = vadd.f32 %v2635_v56, %v764_v63  ;;  %v868_v50 = vrot.slane %v867_v31, 1  ;;  %v2654_v25 = vpop.eup %1721  ;;  %v953_v20 = vrot.slane %v952_v40, 4  ;;  %vm3243_vm10 = vmmov %vm3195_vm0 }
  0xdd   : > { %v862_v47 = vadd.f32 %v861_v5, %v860_v0  ;;  %v966_v10 = vsel %vm3229_vm11, %v946_v12, 0.0  ;;  %v960_v35 = vrot.slane %v959_v6, 4  ;;  %v2660_v44 = vpop.eup %1723  ;;  %v973_v53 = vsel %vm3230_vm12, %v947_v36, 0.0  ;;  %vm3244_vm11 = vmmov %vm3195_vm0 }
  0xde   : > { %v664_v39 = vadd.f32 %v1818_v30, %v663_v3  ;;  %v766_v43 = vadd.f32 %v2644_v2, %v765_v37  ;;  %v869_v29 = vadd.f32 %v868_v50, %v867_v31  ;;  %v954_v51 = vadd.f32 %v953_v20, %v952_v40  ;;  %vm3245_vm12 = vmmov %vm3195_vm0 }
  0xdf   : > { %v872_v14 = vmax.f32 %v2580_v60, %v862_v47  ;;  %v967_v46 = vrot.slane %v966_v10, 4  ;;  %v961_v26 = vadd.f32 %v960_v35, %v959_v6  ;;  %v974_v41 = vrot.slane %v973_v53, 4 }
  0xe0   : > { %1591 = vst [vmem:[%s2545_s17 + $0x4] sm:$0xf] %v664_v39  ;;  %v767_v32 = vadd.f32 %v2650_v11, %v766_v43  ;;  %v873_v17 = vmax.f32 %v2616_v28, %v869_v29  ;;  %v955_v34 = vrot.slane %v954_v51, 2  ;;  %v980_v38 = vsel %vm3231_vm13, %v948_v13, 0.0  ;;  %vm3246_vm13 = vmmov %vm3195_vm0 }
  0xe1   : > { %v968_v23 = vadd.f32 %v967_v46, %v966_v10  ;;  %v987_v19 = vsel %vm3232_vm14, %v949_v21, 0.0  ;;  %v962_v57 = vrot.slane %v961_v26, 2  ;;  %v975_v33 = vadd.f32 %v974_v41, %v973_v53  ;;  %vm3247_vm14 = vmmov %vm3195_vm0 }
  0xe2   : > { %v768_v48 = vadd.f32 %v2654_v25, %v767_v32  ;;  %v875_v22 = vmax.f32 %v872_v14, %v873_v17  ;;  %v956_v62 = vadd.f32 %v955_v34, %v954_v51  ;;  %v981_v8 = vrot.slane %v980_v38, 4 }
  0xe3   : > { %v969_v0 = vrot.slane %v968_v23, 2  ;;  %v963_v63 = vadd.f32 %v962_v57, %v961_v26  ;;  %v988_v31 = vrot.slane %v987_v19, 4  ;;  %v976_v3 = vrot.slane %v975_v33, 2 }
  0xe4   : > { %v769_v12 = vadd.f32 %v2660_v44, %v768_v48  ;;  %v876_v4 = vmax.f32 %v874_v1, %v875_v22  ;;  %v957_v36 = vrot.slane %v956_v62, 1  ;;  %v2673_v13 = vadd.f32 %v981_v8, %v980_v38 }
  0xe5   : > { %v2671_v5 = vadd.f32 %v969_v0, %v968_v23  ;;  %v950_v14 = vmul.f32 %v2619_v16, %v2318_v59  ;;  %v2688_v53 = vadd.f32 %v976_v3, %v975_v33 }
  0xe6   : > { %1725 = vrcp.f32 %v769_v12  ;;  %v877_v21 = vsub.f32 %v2566_v42, %v876_v4  ;;  %v878_v37 = vsub.f32 %v2578_v9, %v876_v4  ;;  %v879_v50 = vsub.f32 %v2580_v60, %v876_v4 }
  0xe7   : > { %v880_v40 = vsub.f32 %v2616_v28, %v876_v4  ;;  %v881_v20 = vsub.f32 %v2610_v45, %v876_v4  ;;  %v882_v1 = vsub.f32 %v2621_v27, %v876_v4  ;;  %v883_v6 = vsub.f32 %v862_v47, %v876_v4 }
  0xe8   : > { %v884_v10 = vsub.f32 %v869_v29, %v876_v4  ;;  %v885_v30 = vmul.f32 1.442695, %v877_v21  ;;  %v887_v39 = vmul.f32 1.442695, %v878_v37  ;;  %v889_v43 = vmul.f32 1.442695, %v879_v50 }
  0xe9   : > { %v891_v35 = vmul.f32 1.442695, %v880_v40  ;;  %v951_v42 = vmul.f32 %v2619_v16, %v2334_v7  ;;  %v989_v9 = vadd.f32 %v988_v31, %v987_v19  ;;  %v893_v60 = vmul.f32 1.442695, %v881_v20 }
  0xea   : > { %1727 = vpow2.f32 %v885_v30  ;;  %v895_v28 = vmul.f32 1.442695, %v882_v1  ;;  %v2685_v51 = vadd.f32 %v957_v36, %v956_v62  ;;  %v897_v45 = vmul.f32 1.442695, %v883_v6 }
  0xeb   : > { %1729 = vpow2.f32 %v887_v39  ;;  %v899_v27 = vmul.f32 1.442695, %v884_v10  ;;  %v964_v47 = vrot.slane %v963_v63, 1  ;;  %v971_v46 = vrot.slane %v2671_v5, 1 }
  0xec   : > { %v1726_v29 = vpop.eup %1725  ;;  %1731 = vpow2.f32 %v889_v43  ;;  %v983_v32 = vrot.slane %v2673_v13, 2  ;;  %v994_v36 = vsel %vm3237_vm4, %v950_v14, 0.0  ;;  %v978_v39 = vrot.slane %v2688_v53, 1  ;;  %vm3252_vm4 = vmmov %vm3195_vm0 }
  0xed   : > { %v771_v16 = vmul.f32 %v1726_v29, %v2601_v15  ;;  %v772_v17 = vmul.f32 %v1726_v29, %v2623_v18  ;;  %v773_v26 = vmul.f32 %v1726_v29, %v2629_v61  ;;  %v774_v41 = vmul.f32 %v1726_v29, %v2635_v56 }
  0xee   : > { %v775_v34 = vmul.f32 %v1726_v29, %v2644_v2  ;;  %v776_v23 = vmul.f32 %v1726_v29, %v2650_v11  ;;  %v777_v38 = vmul.f32 %v1726_v29, %v2654_v25  ;;  %v778_v19 = vmul.f32 %v1726_v29, %v2660_v44 }
  0xef   : > { %v779_v48 = vmul.f32 %v771_v16, %v2284_v49  ;;  %v780_v22 = vmul.f32 %v772_v17, %v2290_v52  ;;  %v781_v15 = vmul.f32 %v773_v26, %v2296_v54  ;;  %v782_v18 = vmul.f32 %v774_v41, %v2307_v24 }
  0xf0   : > { %v2703_v57 = vpop.eup %1727  ;;  %v783_v61 = vmul.f32 %v775_v34, %v2310_v55  ;;  %v784_v56 = vmul.f32 %v776_v23, %v2315_v58  ;;  %v785_v2 = vmul.f32 %v777_v38, %v2318_v59  ;;  %v990_v11 = vrot.slane %v989_v9, 2 }
  0xf1   : > { %v2708_v25 = vpop.eup %1729  ;;  %v786_v44 = vmul.f32 %v778_v19, %v2334_v7  ;;  %v787_v33 = vsel %vm3233_vm15, %v779_v48, 0.0  ;;  %v788_v62 = vsel %vm3234_vm1, %v780_v22, 0.0  ;;  %v790_v0 = vsel %vm3235_vm2, %v781_v15, 0.0  ;;  %vm3248_vm15 = vmmov %vm3195_vm0 }
  0xf2   : > { %v2714_v8 = vpop.eup %1731  ;;  %v789_v12 = vadd.f32 %v788_v62, %v787_v33  ;;  %v792_v4 = vsel %vm3236_vm3, %v782_v18, 0.0  ;;  %v2717_v31 = vadd.f32 %v964_v47, %v963_v63  ;;  %v794_v3 = vsel %vm3238_vm5, %v783_v61, 0.0  ;;  %vm3249_vm1 = vmmov %vm3195_vm0 }
  0xf3   : > { %v796_v21 = vsel %vm3239_vm6, %v784_v56, 0.0  ;;  %1733 = vpow2.f32 %v891_v35  ;;  %v901_v37 = vadd.f32 %v2708_v25, %v2703_v57  ;;  %v798_v40 = vsel %vm3240_vm8, %v785_v2, 0.0  ;;  %vm3250_vm2 = vmmov %vm3195_vm0 }
  0xf4   : > { %v791_v50 = vadd.f32 %v790_v0, %v789_v12  ;;  %1735 = vpow2.f32 %v893_v60  ;;  %v984_v20 = vadd.f32 %v983_v32, %v2673_v13  ;;  %v800_v1 = vsel %vm3195_vm0, %v786_v44, 0.0  ;;  %vm3251_vm3 = vmmov %vm3195_vm0 }
  0xf5   : > { %1737 = vpow2.f32 %v895_v28  ;;  %v991_v63 = vadd.f32 %v990_v11, %v989_v9  ;;  %v995_v6 = vrot.slane %v994_v36, 4  ;;  %v902_v30 = vadd.f32 %v2714_v8, %v901_v37  ;;  %vm3253_vm5 = vmmov %vm3195_vm0 }
  0xf6   : > { %v793_v10 = vadd.f32 %v792_v4, %v791_v50  ;;  %v985_v43 = vrot.slane %v984_v20, 1  ;;  %1739 = vpow2.f32 %v897_v45  ;;  %v1001_v47 = vsel %vm3241_vm7, %v951_v42, 0.0  ;;  %vm3254_vm6 = vmmov %vm3195_vm0 }
  0xf7   : > { %v992_v35 = vrot.slane %v991_v63, 1  ;;  %v996_v14 = vadd.f32 %v995_v6, %v994_v36  ;;  %v1002_v13 = vrot.slane %v1001_v47, 4  ;;  %v2733_v32 = vmul.f32 0.5, %v2315_v58  ;;  %vm3255_vm8 = vmmov %vm3195_vm0 }
  0xf8   : > { %v795_v29 = vadd.f32 %v794_v3, %v793_v10  ;;  %v2730_v60 = vadd.f32 %v985_v43, %v984_v20  ;;  %1741 = vpow2.f32 %v899_v27  ;;  %v2738_v28 = vadd.f32 %v971_v46, %v2671_v5  ;;  %vm3256_vm7 = vmmov %vm3195_vm0 }
  0xf9   : > { %v2735_v9 = vpop.eup %1733  ;;  %v2740_v16 = vadd.f32 %v992_v35, %v991_v63  ;;  %v997_v45 = vrot.slane %v996_v14, 2  ;;  %v1003_v41 = vadd.f32 %v1002_v13, %v1001_v47  ;;  %v2750_v38 = vadd.f32 %v978_v39, %v2688_v53 }
  0xfa   : > { %v2742_v17 = vpop.eup %1735  ;;  %v797_v26 = vadd.f32 %v796_v21, %v795_v29  ;;  %v903_v42 = vadd.f32 %v2735_v9, %v902_v30  ;;  %v1008_v34 = vmax.f32 %v2685_v51, %v2730_v60  ;;  %v1082_v46 = vmul.f32 %v2733_v32, %v2284_v49  ;;  %v1819_v21 = vld [vmem:[%s2029_s25 + $0x8] sm:$0xf] }
  0xfb   : > { %v2747_v23 = vpop.eup %1737  ;;  %v998_v27 = vadd.f32 %v997_v45, %v996_v14  ;;  %v1009_v5 = vmax.f32 %v2717_v31, %v2740_v16  ;;  %v1004_v22 = vrot.slane %v1003_v41, 2  ;;  %v1083_v15 = vmul.f32 %v2733_v32, %v2290_v52 }
  0xfc   : > { %v799_v19 = vadd.f32 %v798_v40, %v797_v26  ;;  %v904_v48 = vadd.f32 %v2742_v17, %v903_v42  ;;  %v2759_v18 = vpop.eup %1739  ;;  %v1084_v56 = vmul.f32 %v2733_v32, %v2296_v54  ;;  %v1085_v2 = vmul.f32 %v2733_v32, %v2307_v24 }
  0xfd   : > { %v999_v61 = vrot.slane %v998_v27, 1  ;;  %v1012_v53 = vmax.f32 %v1008_v34, %v1009_v5  ;;  %v1005_v33 = vadd.f32 %v1004_v22, %v1003_v41  ;;  %v1086_v62 = vmul.f32 %v2733_v32, %v2310_v55 }
  0xfe   : > { %v801_v11 = vadd.f32 %v800_v1, %v799_v19  ;;  %v905_v44 = vadd.f32 %v2747_v23, %v904_v48  ;;  %v1742_v0 = vpop.eup %1741  ;;  %v1087_v4 = vmul.f32 %v2733_v32, %v2315_v58  ;;  %v1088_v36 = vmul.f32 %v2733_v32, %v2318_v59 }
  0xff   : > { %v2768_v12 = vadd.f32 %v999_v61, %v998_v27  ;;  %v1090_v3 = vsel %vm3242_vm9, %v1082_v46, 0.0  ;;  %v1006_v40 = vrot.slane %v1005_v33, 1  ;;  %v1097_v63 = vsel %vm3243_vm10, %v1083_v15, 0.0  ;;  %vm3257_vm9 = vmmov %vm3195_vm0 }
 0x100   : > { %v802_v37 = vadd.f32 %v1819_v21, %v801_v11  ;;  %v906_v50 = vadd.f32 %v2759_v18, %v905_v44  ;;  %v1091_v20 = vrot.slane %v1090_v3, 4  ;;  %v1104_v6 = vsel %vm3244_vm11, %v1084_v56, 0.0  ;;  %vm3258_vm10 = vmmov %vm3195_vm0 }
 0x101   : > { %v1010_v1 = vmax.f32 %v2738_v28, %v2768_v12  ;;  %v1111_v10 = vsel %vm3245_vm12, %v1085_v2, 0.0  ;;  %v2783_v39 = vadd.f32 %v1006_v40, %v1005_v33  ;;  %v1098_v35 = vrot.slane %v1097_v63, 4  ;;  %vm3259_vm11 = vmmov %vm3195_vm0 }
 0x102   : > { %1592 = vst [vmem:[%s2545_s17 + $0x8] sm:$0xf] %v802_v37  ;;  %v907_v30 = vadd.f32 %v1742_v0, %v906_v50  ;;  %v1092_v43 = vadd.f32 %v1091_v20, %v1090_v3  ;;  %v1105_v14 = vrot.slane %v1104_v6, 4  ;;  %v1112_v47 = vrot.slane %v1111_v10, 4  ;;  %vm3260_vm12 = vmmov %vm3195_vm0 }
 0x103   : > { %v1118_v29 = vsel %vm3246_vm13, %v1086_v62, 0.0  ;;  %v1125_v13 = vsel %vm3247_vm14, %v1087_v4, 0.0  ;;  %v1011_v45 = vmax.f32 %v2750_v38, %v2783_v39  ;;  %v1099_v42 = vadd.f32 %v1098_v35, %v1097_v63  ;;  %vm3261_vm13 = vmmov %vm3195_vm0 }
 0x104   : > { %1743 = vrcp.f32 %v907_v30  ;;  %v1093_v26 = vrot.slane %v1092_v43, 2  ;;  %v1106_v41 = vadd.f32 %v1105_v14, %v1104_v6  ;;  %v1113_v34 = vadd.f32 %v1112_v47, %v1111_v10  ;;  %vm3262_vm14 = vmmov %vm3195_vm0 }
 0x105   : > { %v1119_v27 = vrot.slane %v1118_v29, 4  ;;  %v1126_v5 = vrot.slane %v1125_v13, 4  ;;  %v1013_v46 = vmax.f32 %v1010_v1, %v1011_v45  ;;  %v1100_v48 = vrot.slane %v1099_v42, 2 }
 0x106   : > { %v1094_v19 = vadd.f32 %v1093_v26, %v1092_v43  ;;  %v2790_v22 = vsel %vm3248_vm15, %v1088_v36, 0.0  ;;  %v1107_v15 = vrot.slane %v1106_v41, 2  ;;  %v1114_v61 = vrot.slane %v1113_v34, 2  ;;  %vm3263_vm15 = vmmov %vm3195_vm0 }
 0x107   : > { %v1120_v56 = vadd.f32 %v1119_v27, %v1118_v29  ;;  %v1014_v2 = vmax.f32 %v1012_v53, %v1013_v46  ;;  %v2794_v11 = vmul.f32 %v2733_v32, %v2334_v7  ;;  %v1127_v33 = vadd.f32 %v1126_v5, %v1125_v13 }
 0x108   : > { %v1095_v44 = vrot.slane %v1094_v19, 1  ;;  %v1101_v62 = vadd.f32 %v1100_v48, %v1099_v42  ;;  %v1108_v4 = vadd.f32 %v1107_v15, %v1106_v41  ;;  %v2796_v3 = vadd.f32 %v1114_v61, %v1113_v34 }
 0x109   : > { %v1133_v21 = vrot.slane %v2790_v22, 4  ;;  %v1015_v36 = vsub.f32 %v2685_v51, %v1014_v2  ;;  %v1016_v50 = vsub.f32 %v2717_v31, %v1014_v2  ;;  %v1017_v40 = vsub.f32 %v2738_v28, %v1014_v2 }
 0x10a   : > { %v1744_v37 = vpop.eup %1743  ;;  %v1121_v53 = vrot.slane %v1120_v56, 2  ;;  %v1128_v13 = vrot.slane %v1127_v33, 2  ;;  %v1020_v42 = vsub.f32 %v2740_v16, %v1014_v2  ;;  %v1021_v34 = vsub.f32 %v2768_v12, %v1014_v2 }
 0x10b   : > { %v909_v20 = vmul.f32 %v1744_v37, %v2703_v57  ;;  %v910_v32 = vmul.f32 %v1744_v37, %v2708_v25  ;;  %v911_v1 = vmul.f32 %v1744_v37, %v2714_v8  ;;  %v912_v63 = vmul.f32 %v1744_v37, %v2735_v9 }
 0x10c   : > { %v913_v6 = vmul.f32 %v1744_v37, %v2742_v17  ;;  %v914_v10 = vmul.f32 %v1744_v37, %v2747_v23  ;;  %v915_v30 = vmul.f32 %v1744_v37, %v2759_v18  ;;  %v916_v51 = vmul.f32 %v1744_v37, %v1742_v0 }
 0x10d   : > { %v917_v31 = vmul.f32 %v909_v20, %v2284_v49  ;;  %v918_v28 = vmul.f32 %v910_v32, %v2290_v52  ;;  %v919_v43 = vmul.f32 %v911_v1, %v2296_v54  ;;  %v920_v57 = vmul.f32 %v912_v63, %v2307_v24 }
 0x10e   : > { %v921_v25 = vmul.f32 %v913_v6, %v2310_v55  ;;  %v922_v8 = vmul.f32 %v914_v10, %v2315_v58  ;;  %v923_v9 = vmul.f32 %v915_v30, %v2318_v59  ;;  %v1018_v17 = vsub.f32 %v2750_v38, %v1014_v2 }
 0x10f   : > { %v924_v23 = vmul.f32 %v916_v51, %v2334_v7  ;;  %v925_v18 = vsel %vm3249_vm1, %v917_v31, 0.0  ;;  %v926_v0 = vsel %vm3250_vm2, %v918_v28, 0.0  ;;  %v928_v35 = vsel %vm3251_vm3, %v919_v43, 0.0  ;;  %vm3264_vm1 = vmmov %vm3195_vm0 }
 0x110   : > { %v927_v14 = vadd.f32 %v926_v0, %v925_v18  ;;  %v930_v47 = vsel %vm3252_vm4, %v920_v57, 0.0  ;;  %v932_v29 = vsel %vm3253_vm5, %v921_v25, 0.0  ;;  %v934_v45 = vsel %vm3254_vm6, %v922_v8, 0.0  ;;  %v1820_v0 = vld [vmem:[%s2029_s25 + $0xc] sm:$0xf]  ;;  %vm3265_vm2 = vmmov %vm3195_vm0 }
 0x111   : > { %v936_v26 = vsel %vm3255_vm8, %v923_v9, 0.0  ;;  %v1019_v38 = vsub.f32 %v2730_v60, %v1014_v2  ;;  %v1023_v27 = vmul.f32 1.442695, %v1015_v36  ;;  %v1025_v5 = vmul.f32 1.442695, %v1016_v50  ;;  %vm3266_vm3 = vmmov %vm3195_vm0 }
 0x112   : > { %v929_v41 = vadd.f32 %v928_v35, %v927_v14  ;;  %v938_v46 = vsel %vm3195_vm0, %v924_v23, 0.0  ;;  %v1022_v48 = vsub.f32 %v2783_v39, %v1014_v2  ;;  %v1027_v15 = vmul.f32 1.442695, %v1017_v40  ;;  %vm3267_vm4 = vmmov %vm3195_vm0 }
 0x113   : > { %v1029_v61 = vmul.f32 1.442695, %v1018_v17  ;;  %1745 = vpow2.f32 %v1023_v27  ;;  %v1031_v20 = vmul.f32 1.442695, %v1019_v38  ;;  %v2830_v32 = vadd.f32 %v1095_v44, %v1094_v19  ;;  %vm3268_vm5 = vmmov %vm3195_vm0 }
 0x114   : > { %v931_v37 = vadd.f32 %v930_v47, %v929_v41  ;;  %1747 = vpow2.f32 %v1025_v5  ;;  %v1033_v60 = vmul.f32 1.442695, %v1020_v42  ;;  %v1102_v1 = vrot.slane %v1101_v62, 1  ;;  %vm3269_vm6 = vmmov %vm3195_vm0 }
 0x115   : > { %v1109_v16 = vrot.slane %v1108_v4, 1  ;;  %1749 = vpow2.f32 %v1027_v15  ;;  %v1035_v12 = vmul.f32 1.442695, %v1021_v34  ;;  %v1122_v36 = vadd.f32 %v1121_v53, %v1120_v56  ;;  %vm3270_vm8 = vmmov %vm3195_vm0 }
 0x116   : > { %v933_v63 = vadd.f32 %v932_v29, %v931_v37  ;;  %1751 = vpow2.f32 %v1029_v61  ;;  %v1037_v50 = vmul.f32 1.442695, %v1022_v48  ;;  %v1116_v6 = vrot.slane %v2796_v3, 1 }
 0x117   : > { %v1129_v39 = vadd.f32 %v1128_v13, %v1127_v33  ;;  %v2833_v40 = vadd.f32 %v1102_v1, %v1101_v62  ;;  %v2835_v10 = vadd.f32 %v1109_v16, %v1108_v4  ;;  %v1123_v19 = vrot.slane %v1122_v36, 1 }
 0x118   : > { %v935_v2 = vadd.f32 %v934_v45, %v933_v63  ;;  %1753 = vpow2.f32 %v1031_v20  ;;  %v1134_v30 = vadd.f32 %v1133_v21, %v2790_v22  ;;  %v1139_v56 = vsel %vm3256_vm7, %v2794_v11, 0.0  ;;  %vm3271_vm7 = vmmov %vm3195_vm0 }
 0x119   : > { %v1130_v44 = vrot.slane %v1129_v39, 1  ;;  %v2842_v53 = vpop.eup %1745  ;;  %1755 = vpow2.f32 %v1033_v60  ;;  %v2844_v33 = vadd.f32 %v1123_v19, %v1122_v36  ;;  %v1140_v62 = vrot.slane %v1139_v56, 4 }
 0x11a   : > { %v937_v51 = vadd.f32 %v936_v26, %v935_v2  ;;  %v2846_v4 = vpop.eup %1747  ;;  %1757 = vpow2.f32 %v1035_v12  ;;  %v1135_v28 = vrot.slane %v1134_v30, 2  ;;  %v2851_v43 = vmul.f32 0.5, %v2318_v59 }
 0x11b   : > { %v2848_v31 = vadd.f32 %v1130_v44, %v1129_v39  ;;  %v2853_v22 = vpop.eup %1749  ;;  %v1039_v21 = vadd.f32 %v2846_v4, %v2842_v53  ;;  %v1141_v57 = vadd.f32 %v1140_v62, %v1139_v56  ;;  %v1146_v25 = vmax.f32 %v2830_v32, %v2844_v33 }
 0x11c   : > { %v939_v11 = vadd.f32 %v938_v46, %v937_v51  ;;  %v2859_v8 = vpop.eup %1751  ;;  %v1136_v9 = vadd.f32 %v1135_v28, %v1134_v30  ;;  %v1220_v23 = vmul.f32 %v2851_v43, %v2284_v49  ;;  %v1221_v18 = vmul.f32 %v2851_v43, %v2290_v52 }
 0x11d   : > { %v1147_v17 = vmax.f32 %v2833_v40, %v2848_v31  ;;  %1759 = vpow2.f32 %v1037_v50  ;;  %v1040_v14 = vadd.f32 %v2853_v22, %v1039_v21  ;;  %v1142_v47 = vrot.slane %v1141_v57, 2 }
 0x11e   : > { %v940_v35 = vadd.f32 %v1820_v0, %v939_v11  ;;  %v2869_v29 = vpop.eup %1753  ;;  %v1137_v13 = vrot.slane %v1136_v9, 1  ;;  %v1222_v45 = vmul.f32 %v2851_v43, %v2296_v54  ;;  %v1223_v26 = vmul.f32 %v2851_v43, %v2307_v24 }
 0x11f   : > { %v1224_v38 = vmul.f32 %v2851_v43, %v2310_v55  ;;  %v2877_v42 = vpop.eup %1755  ;;  %v1041_v41 = vadd.f32 %v2859_v8, %v1040_v14  ;;  %v1117_v34 = vadd.f32 %v1116_v6, %v2796_v3  ;;  %v1143_v27 = vadd.f32 %v1142_v47, %v1141_v57 }
 0x120   : > { %1593 = vst [vmem:[%s2545_s17 + $0xc] sm:$0xf] %v940_v35  ;;  %v1150_v5 = vmax.f32 %v1146_v25, %v1147_v17  ;;  %v2882_v46 = vpop.eup %1757  ;;  %v2884_v48 = vadd.f32 %v1137_v13, %v1136_v9  ;;  %v1225_v15 = vmul.f32 %v2851_v43, %v2315_v58  ;;  %v1228_v61 = vsel %vm3257_vm9, %v1220_v23, 0.0  ;;  %vm3272_vm9 = vmmov %vm3195_vm0 }
 0x121   : > { %v1235_v37 = vsel %vm3258_vm10, %v1221_v18, 0.0  ;;  %v1042_v20 = vadd.f32 %v2869_v29, %v1041_v41  ;;  %v1144_v60 = vrot.slane %v1143_v27, 1  ;;  %v1229_v1 = vrot.slane %v1228_v61, 4  ;;  %vm3273_vm10 = vmmov %vm3195_vm0 }
 0x122   : > { %v1236_v16 = vrot.slane %v1235_v37, 4  ;;  %v1148_v3 = vmax.f32 %v2835_v10, %v2884_v48  ;;  %v1242_v63 = vsel %vm3259_vm11, %v1222_v45, 0.0  ;;  %v1249_v12 = vsel %vm3260_vm12, %v1223_v26, 0.0  ;;  %vm3274_vm11 = vmmov %vm3195_vm0 }
 0x123   : > { %v1256_v36 = vsel %vm3261_vm13, %v1224_v38, 0.0  ;;  %v1760_v50 = vpop.eup %1759  ;;  %v1043_v6 = vadd.f32 %v2877_v42, %v1042_v20  ;;  %v2897_v39 = vadd.f32 %v1144_v60, %v1143_v27  ;;  %v1230_v2 = vadd.f32 %v1229_v1, %v1228_v61  ;;  %vm3275_vm12 = vmmov %vm3195_vm0 }
 0x124   : > { %v1237_v19 = vadd.f32 %v1236_v16, %v1235_v37  ;;  %v1243_v44 = vrot.slane %v1242_v63, 4  ;;  %v1250_v30 = vrot.slane %v1249_v12, 4  ;;  %v1257_v56 = vrot.slane %v1256_v36, 4  ;;  %vm3276_vm13 = vmmov %vm3195_vm0 }
 0x125   : > { %v1263_v51 = vsel %vm3262_vm14, %v1225_v15, 0.0  ;;  %v1044_v62 = vadd.f32 %v2882_v46, %v1043_v6  ;;  %v1149_v28 = vmax.f32 %v1117_v34, %v2897_v39  ;;  %v1231_v11 = vrot.slane %v1230_v2, 2  ;;  %vm3277_vm14 = vmmov %vm3195_vm0 }
 0x126   : > { %v1238_v21 = vrot.slane %v1237_v19, 2  ;;  %v1244_v57 = vadd.f32 %v1243_v44, %v1242_v63  ;;  %v1251_v25 = vadd.f32 %v1250_v30, %v1249_v12  ;;  %v1258_v9 = vadd.f32 %v1257_v56, %v1256_v36 }
 0x127   : > { %v1264_v17 = vrot.slane %v1263_v51, 4  ;;  %v1045_v23 = vadd.f32 %v1760_v50, %v1044_v62  ;;  %v1151_v18 = vmax.f32 %v1148_v3, %v1149_v28  ;;  %v1232_v0 = vadd.f32 %v1231_v11, %v1230_v2 }
 0x128   : > { %v1239_v35 = vadd.f32 %v1238_v21, %v1237_v19  ;;  %v2904_v14 = vmul.f32 %v2851_v43, %v2318_v59  ;;  %v1245_v47 = vrot.slane %v1244_v57, 2  ;;  %v1252_v13 = vrot.slane %v1251_v25, 2 }
 0x129   : > { %v1259_v45 = vrot.slane %v1258_v9, 2  ;;  %1761 = vrcp.f32 %v1045_v23  ;;  %v1152_v26 = vmax.f32 %v1150_v5, %v1151_v18  ;;  %v2908_v38 = vmul.f32 %v2851_v43, %v2334_v7 }
 0x12a   : > { %v1265_v41 = vadd.f32 %v1264_v17, %v1263_v51  ;;  %v1233_v27 = vrot.slane %v1232_v0, 1  ;;  %v1240_v15 = vrot.slane %v1239_v35, 1  ;;  %v1246_v61 = vadd.f32 %v1245_v47, %v1244_v57 }
 0x12b   : > { %v2910_v37 = vadd.f32 %v1252_v13, %v1251_v25  ;;  %v1153_v20 = vsub.f32 %v2830_v32, %v1152_v26  ;;  %v1154_v60 = vsub.f32 %v2833_v40, %v1152_v26  ;;  %v1155_v1 = vsub.f32 %v2835_v10, %v1152_v26 }
 0x12c   : > { %v1156_v16 = vsub.f32 %v1117_v34, %v1152_v26  ;;  %v1157_v3 = vsub.f32 %v2844_v33, %v1152_v26  ;;  %v1158_v5 = vsub.f32 %v2848_v31, %v1152_v26  ;;  %v1159_v43 = vsub.f32 %v2884_v48, %v1152_v26 }
 0x12d   : > { %v1260_v63 = vadd.f32 %v1259_v45, %v1258_v9  ;;  %v1160_v12 = vsub.f32 %v2897_v39, %v1152_v26  ;;  %v1161_v36 = vmul.f32 1.442695, %v1153_v20  ;;  %v1163_v6 = vmul.f32 1.442695, %v1154_v60 }
 0x12e   : > { %v1266_v2 = vrot.slane %v1265_v41, 2  ;;  %v1165_v19 = vmul.f32 1.442695, %v1155_v1  ;;  %v1167_v44 = vmul.f32 1.442695, %v1156_v16  ;;  %v2919_v30 = vadd.f32 %v1233_v27, %v1232_v0 }
 0x12f   : > { %v1169_v32 = vmul.f32 1.442695, %v1157_v3  ;;  %v1762_v40 = vpop.eup %1761  ;;  %1763 = vpow2.f32 %v1161_v36  ;;  %v1171_v10 = vmul.f32 1.442695, %v1158_v5  ;;  %v1173_v34 = vmul.f32 1.442695, %v1159_v43 }
 0x130   : > { %v2921_v33 = vadd.f32 %v1240_v15, %v1239_v35  ;;  %v1047_v31 = vmul.f32 %v1762_v40, %v2842_v53  ;;  %v1048_v48 = vmul.f32 %v1762_v40, %v2846_v4  ;;  %v1049_v39 = vmul.f32 %v1762_v40, %v2853_v22 }
 0x131   : > { %v1050_v56 = vmul.f32 %v1762_v40, %v2859_v8  ;;  %v1051_v51 = vmul.f32 %v1762_v40, %v2869_v29  ;;  %v1052_v62 = vmul.f32 %v1762_v40, %v2877_v42  ;;  %v1053_v28 = vmul.f32 %v1762_v40, %v2882_v46 }
 0x132   : > { %v1054_v11 = vmul.f32 %v1762_v40, %v1760_v50  ;;  %v1055_v21 = vmul.f32 %v1047_v31, %v2284_v49  ;;  %v1056_v57 = vmul.f32 %v1048_v48, %v2290_v52  ;;  %v1057_v25 = vmul.f32 %v1049_v39, %v2296_v54 }
 0x133   : > { %v1058_v53 = vmul.f32 %v1050_v56, %v2307_v24  ;;  %v1059_v4 = vmul.f32 %v1051_v51, %v2310_v55  ;;  %v1060_v22 = vmul.f32 %v1052_v62, %v2315_v58  ;;  %v1061_v8 = vmul.f32 %v1053_v28, %v2318_v59 }
 0x134   : > { %v1175_v29 = vmul.f32 1.442695, %v1160_v12  ;;  %v1062_v42 = vmul.f32 %v1054_v11, %v2334_v7  ;;  %v1063_v46 = vsel %vm3263_vm15, %v1055_v21, 0.0  ;;  %v1064_v50 = vsel %vm3264_vm1, %v1056_v57, 0.0  ;;  %vm3278_vm15 = vmmov %vm3195_vm0 }
 0x135   : > { %v1066_v9 = vsel %vm3265_vm2, %v1057_v25, 0.0  ;;  %v2941_v17 = vpop.eup %1763  ;;  %v1065_v23 = vadd.f32 %v1064_v50, %v1063_v46  ;;  %v1068_v18 = vsel %vm3266_vm3, %v1058_v53, 0.0  ;;  %v1070_v0 = vsel %vm3267_vm4, %v1059_v4, 0.0  ;;  %vm3279_vm1 = vmmov %vm3195_vm0 }
 0x136   : > { %v1247_v35 = vrot.slane %v1246_v61, 1  ;;  %v1072_v47 = vsel %vm3268_vm5, %v1060_v22, 0.0  ;;  %v1074_v13 = vsel %vm3269_vm6, %v1061_v8, 0.0  ;;  %1765 = vpow2.f32 %v1163_v6  ;;  %vm3280_vm2 = vmmov %vm3195_vm0 }
 0x137   : > { %v1254_v45 = vrot.slane %v2910_v37, 1  ;;  %v1067_v26 = vadd.f32 %v1066_v9, %v1065_v23  ;;  %1767 = vpow2.f32 %v1165_v19  ;;  %v1261_v27 = vrot.slane %v1260_v63, 1  ;;  %vm3281_vm3 = vmmov %vm3195_vm0 }
 0x138   : > { %v1267_v15 = vadd.f32 %v1266_v2, %v1265_v41  ;;  %v1076_v20 = vsel %vm3270_vm8, %v1062_v42, 0.0  ;;  %1769 = vpow2.f32 %v1167_v44  ;;  %v1270_v60 = vsel %vm3195_vm0, %v2904_v14, 0.0  ;;  %vm3282_vm4 = vmmov %vm3195_vm0 }
 0x139   : > { %v1277_v1 = vsel %vm3271_vm7, %v2908_v38, 0.0  ;;  %v1069_v16 = vadd.f32 %v1068_v18, %v1067_v26  ;;  %v2953_v3 = vadd.f32 %v1247_v35, %v1246_v61  ;;  %v2955_v5 = vadd.f32 %v1261_v27, %v1260_v63  ;;  %vm3283_vm5 = vmmov %vm3195_vm0 }
 0x13a   : > { %v1268_v43 = vrot.slane %v1267_v15, 1  ;;  %1771 = vpow2.f32 %v1169_v32  ;;  %v1271_v12 = vrot.slane %v1270_v60, 4  ;;  %v1278_v36 = vrot.slane %v1277_v1, 4  ;;  %vm3284_vm6 = vmmov %vm3195_vm0 }
 0x13b   : > { %v2958_v41 = vmul.f32 0.5, %v2334_v7  ;;  %v1071_v6 = vadd.f32 %v1070_v0, %v1069_v16  ;;  %1773 = vpow2.f32 %v1171_v10  ;;  %v2961_v2 = vadd.f32 %v1254_v45, %v2910_v37  ;;  %v1821_v0 = vld [vmem:[%s2029_s25 + $0x10] sm:$0xf]  ;;  %vm3285_vm8 = vmmov %vm3195_vm0 }
 0x13c   : > { %v2963_v14 = vadd.f32 %v1268_v43, %v1267_v15  ;;  %v2965_v38 = vpop.eup %1765  ;;  %1775 = vpow2.f32 %v1173_v34  ;;  %v1272_v61 = vadd.f32 %v1271_v12, %v1270_v60  ;;  %v1279_v63 = vadd.f32 %v1278_v36, %v1277_v1  ;;  %vm3286_vm7 = vmmov %vm3195_vm0 }
 0x13d   : > { %v1284_v19 = vmax.f32 %v2919_v30, %v2955_v5  ;;  %v2969_v44 = vpop.eup %1767  ;;  %v1073_v32 = vadd.f32 %v1072_v47, %v1071_v6  ;;  %v1177_v40 = vadd.f32 %v2965_v38, %v2941_v17  ;;  %v1358_v10 = vmul.f32 %v2958_v41, %v2284_v49 }
 0x13e   : > { %v1285_v37 = vmax.f32 %v2921_v33, %v2963_v14  ;;  %v2977_v31 = vpop.eup %1769  ;;  %1777 = vpow2.f32 %v1175_v29  ;;  %v1273_v34 = vrot.slane %v1272_v61, 2  ;;  %v1280_v48 = vrot.slane %v1279_v63, 2 }
 0x13f   : > { %v1359_v39 = vmul.f32 %v2958_v41, %v2290_v52  ;;  %v1075_v56 = vadd.f32 %v1074_v13, %v1073_v32  ;;  %v1178_v51 = vadd.f32 %v2969_v44, %v1177_v40  ;;  %v1360_v62 = vmul.f32 %v2958_v41, %v2296_v54 }
 0x140   : > { %v1361_v28 = vmul.f32 %v2958_v41, %v2307_v24  ;;  %v2986_v11 = vpop.eup %1771  ;;  %v1274_v21 = vadd.f32 %v1273_v34, %v1272_v61  ;;  %v1281_v57 = vadd.f32 %v1280_v48, %v1279_v63  ;;  %v1288_v25 = vmax.f32 %v1284_v19, %v1285_v37 }
 0x141   : > { %v1362_v53 = vmul.f32 %v2958_v41, %v2310_v55  ;;  %v2990_v4 = vpop.eup %1773  ;;  %v1077_v22 = vadd.f32 %v1076_v20, %v1075_v56  ;;  %v1179_v8 = vadd.f32 %v2977_v31, %v1178_v51  ;;  %v1363_v29 = vmul.f32 %v2958_v41, %v2315_v58 }
 0x142   : > { %v1366_v42 = vsel %vm3272_vm9, %v1358_v10, 0.0  ;;  %v2996_v46 = vpop.eup %1775  ;;  %v1275_v50 = vrot.slane %v1274_v21, 1  ;;  %v1282_v9 = vrot.slane %v1281_v57, 1  ;;  %v1373_v18 = vsel %vm3273_vm10, %v1359_v39, 0.0  ;;  %vm3287_vm9 = vmmov %vm3195_vm0 }
 0x143   : > { %v1367_v23 = vrot.slane %v1366_v42, 4  ;;  %v1078_v35 = vadd.f32 %v1821_v0, %v1077_v22  ;;  %v1180_v47 = vadd.f32 %v2986_v11, %v1179_v8  ;;  %v1374_v13 = vrot.slane %v1373_v18, 4  ;;  %vm3288_vm10 = vmmov %vm3195_vm0 }
 0x144   : > { %v1380_v45 = vsel %vm3274_vm11, %v1360_v62, 0.0  ;;  %v3002_v26 = vpop.eup %1777  ;;  %v3004_v27 = vadd.f32 %v1275_v50, %v1274_v21  ;;  %v3006_v15 = vadd.f32 %v1282_v9, %v1281_v57  ;;  %v1387_v43 = vsel %vm3275_vm12, %v1361_v28, 0.0  ;;  %vm3289_vm11 = vmmov %vm3195_vm0 }
 0x145   : > { %v1368_v20 = vadd.f32 %v1367_v23, %v1366_v42  ;;  %v1381_v60 = vrot.slane %v1380_v45, 4  ;;  %1594 = vst [vmem:[%s2545_s17 + $0x10] sm:$0xf] %v1078_v35  ;;  %v1181_v1 = vadd.f32 %v2990_v4, %v1180_v47  ;;  %v1375_v16 = vadd.f32 %v1374_v13, %v1373_v18  ;;  %vm3290_vm12 = vmmov %vm3195_vm0 }
 0x146   : > { %v1394_v12 = vsel %vm3276_vm13, %v1362_v53, 0.0  ;;  %v1286_v36 = vmax.f32 %v2953_v3, %v3004_v27  ;;  %v1287_v6 = vmax.f32 %v2961_v2, %v3006_v15  ;;  %v1388_v40 = vrot.slane %v1387_v43, 4  ;;  %vm3291_vm13 = vmmov %vm3195_vm0 }
 0x147   : > { %v1369_v61 = vrot.slane %v1368_v20, 2  ;;  %v1382_v63 = vadd.f32 %v1381_v60, %v1380_v45  ;;  %v1182_v19 = vadd.f32 %v2996_v46, %v1181_v1  ;;  %v1376_v32 = vrot.slane %v1375_v16, 2 }
 0x148   : > { %v1395_v37 = vrot.slane %v1394_v12, 4  ;;  %v1289_v10 = vmax.f32 %v1286_v36, %v1287_v6  ;;  %v1401_v51 = vsel %vm3277_vm14, %v1363_v29, 0.0  ;;  %v1389_v28 = vadd.f32 %v1388_v40, %v1387_v43  ;;  %vm3292_vm14 = vmmov %vm3195_vm0 }
 0x149   : > { %v1183_v34 = vadd.f32 %v3002_v26, %v1182_v19  ;;  %v1370_v48 = vadd.f32 %v1369_v61, %v1368_v20  ;;  %v1383_v56 = vrot.slane %v1382_v63, 2  ;;  %v1377_v62 = vadd.f32 %v1376_v32, %v1375_v16 }
 0x14a   : > { %v1290_v39 = vmax.f32 %v1288_v25, %v1289_v10  ;;  %v1396_v21 = vadd.f32 %v1395_v37, %v1394_v12  ;;  %v1364_v8 = vmul.f32 %v2958_v41, %v2318_v59  ;;  %v1365_v29 = vmul.f32 %v2958_v41, %v2334_v7 }
 0x14b   : > { %1779 = vrcp.f32 %v1183_v34  ;;  %v1371_v50 = vrot.slane %v1370_v48, 1  ;;  %v3028_v18 = vadd.f32 %v1383_v56, %v1382_v63  ;;  %v1378_v0 = vrot.slane %v1377_v62, 1 }
 0x14c   : > { %v1291_v57 = vsub.f32 %v2919_v30, %v1290_v39  ;;  %v1292_v53 = vsub.f32 %v2921_v33, %v1290_v39  ;;  %v1293_v22 = vsub.f32 %v2953_v3, %v1290_v39  ;;  %v1294_v42 = vsub.f32 %v2961_v2, %v1290_v39 }
 0x14d   : > { %v1295_v25 = vsub.f32 %v2955_v5, %v1290_v39  ;;  %v1402_v30 = vrot.slane %v1401_v51, 4  ;;  %v1296_v33 = vsub.f32 %v2963_v14, %v1290_v39  ;;  %v1390_v3 = vrot.slane %v1389_v28, 2 }
 0x14e   : > { %v1299_v9 = vmul.f32 1.442695, %v1291_v57  ;;  %v1301_v23 = vmul.f32 1.442695, %v1292_v53  ;;  %v1397_v35 = vrot.slane %v1396_v21, 2  ;;  %v1297_v47 = vsub.f32 %v3004_v27, %v1290_v39 }
 0x14f   : > { %v1298_v2 = vsub.f32 %v3006_v15, %v1290_v39  ;;  %v1303_v5 = vmul.f32 1.442695, %v1293_v22  ;;  %v1305_v41 = vmul.f32 1.442695, %v1294_v42  ;;  %v1307_v45 = vmul.f32 1.442695, %v1295_v25 }
 0x150   : > { %1781 = vpow2.f32 %v1299_v9  ;;  %v3033_v20 = vadd.f32 %v1371_v50, %v1370_v48  ;;  %v1309_v12 = vmul.f32 1.442695, %v1296_v33  ;;  %v3048_v63 = vadd.f32 %v1378_v0, %v1377_v62 }
 0x151   : > { %v1780_v13 = vpop.eup %1779  ;;  %1783 = vpow2.f32 %v1301_v23  ;;  %v1403_v32 = vadd.f32 %v1402_v30, %v1401_v51  ;;  %v1398_v34 = vadd.f32 %v1397_v35, %v1396_v21  ;;  %v1391_v56 = vadd.f32 %v1390_v3, %v1389_v28 }
 0x152   : > { %v1185_v60 = vmul.f32 %v1780_v13, %v2941_v17  ;;  %v1186_v1 = vmul.f32 %v1780_v13, %v2965_v38  ;;  %v1187_v14 = vmul.f32 %v1780_v13, %v2969_v44  ;;  %v1188_v16 = vmul.f32 %v1780_v13, %v2977_v31 }
 0x153   : > { %v1189_v27 = vmul.f32 %v1780_v13, %v2986_v11  ;;  %v1190_v15 = vmul.f32 %v1780_v13, %v2990_v4  ;;  %v1191_v43 = vmul.f32 %v1780_v13, %v2996_v46  ;;  %v1192_v38 = vmul.f32 %v1780_v13, %v3002_v26 }
 0x154   : > { %v1193_v36 = vmul.f32 %v1185_v60, %v2284_v49  ;;  %v1194_v6 = vmul.f32 %v1186_v1, %v2290_v52  ;;  %v1195_v61 = vmul.f32 %v1187_v14, %v2296_v54  ;;  %v1196_v17 = vmul.f32 %v1188_v16, %v2307_v24 }
 0x155   : > { %v1197_v44 = vmul.f32 %v1189_v27, %v2310_v55  ;;  %v1311_v31 = vmul.f32 1.442695, %v1297_v47  ;;  %v1198_v37 = vmul.f32 %v1190_v15, %v2315_v58  ;;  %v1313_v26 = vmul.f32 1.442695, %v1298_v2 }
 0x156   : > { %v3050_v11 = vpop.eup %1781  ;;  %v1201_v4 = vsel %vm3278_vm15, %v1193_v36, 0.0  ;;  %v1202_v46 = vsel %vm3279_vm1, %v1194_v6, 0.0  ;;  %v1204_v19 = vsel %vm3280_vm2, %v1195_v61, 0.0  ;;  %v1199_v48 = vmul.f32 %v1191_v43, %v2318_v59  ;;  %vm3293_vm15 = vmmov %vm3195_vm0 }
 0x157   : > { %v3055_v40 = vpop.eup %1783  ;;  %v1203_v10 = vadd.f32 %v1202_v46, %v1201_v4  ;;  %v1206_v39 = vsel %vm3281_vm3, %v1196_v17, 0.0  ;;  %1785 = vpow2.f32 %v1303_v5  ;;  %v1200_v62 = vmul.f32 %v1192_v38, %v2334_v7  ;;  %vm3294_vm1 = vmmov %vm3195_vm0 }
 0x158   : > { %v1208_v53 = vsel %vm3282_vm4, %v1197_v44, 0.0  ;;  %1787 = vpow2.f32 %v1305_v41  ;;  %v1404_v51 = vrot.slane %v1403_v32, 2  ;;  %v1408_v22 = vsel %vm3283_vm5, %v1364_v8, 0.0  ;;  %vm3295_vm2 = vmmov %vm3195_vm0 }
 0x159   : > { %v1205_v57 = vadd.f32 %v1204_v19, %v1203_v10  ;;  %1789 = vpow2.f32 %v1307_v45  ;;  %v1415_v42 = vsel %vm3284_vm6, %v1365_v29, 0.0  ;;  %v1210_v21 = vsel %vm3285_vm8, %v1198_v37, 0.0  ;;  %v1822_v37 = vld [vmem:[%s2029_s25 + $0x14] sm:$0xf]  ;;  %vm3296_vm3 = vmmov %vm3195_vm0 }
 0x15a   : > { %v1315_v50 = vadd.f32 %v3055_v40, %v3050_v11  ;;  %v1399_v9 = vrot.slane %v1398_v34, 1  ;;  %1791 = vpow2.f32 %v1309_v12  ;;  %v1405_v28 = vadd.f32 %v1404_v51, %v1403_v32  ;;  %vm3297_vm4 = vmmov %vm3195_vm0 }
 0x15b   : > { %v1207_v25 = vadd.f32 %v1206_v39, %v1205_v57  ;;  %v1409_v23 = vrot.slane %v1408_v22, 4  ;;  %v1416_v30 = vrot.slane %v1415_v42, 4  ;;  %v1212_v0 = vsel %vm3195_vm0, %v1199_v48, 0.0  ;;  %vm3298_vm5 = vmmov %vm3195_vm0 }
 0x15c   : > { %v1214_v3 = vsel %vm3286_vm7, %v1200_v62, 0.0  ;;  %v1385_v8 = vrot.slane %v3028_v18, 1  ;;  %1793 = vpow2.f32 %v1311_v31  ;;  %v1406_v29 = vrot.slane %v1405_v28, 1  ;;  %vm3299_vm6 = vmmov %vm3195_vm0 }
 0x15d   : > { %v1209_v33 = vadd.f32 %v1208_v53, %v1207_v25  ;;  %v1786_v35 = vpop.eup %1785  ;;  %v1410_v47 = vadd.f32 %v1409_v23, %v1408_v22  ;;  %v1417_v2 = vadd.f32 %v1416_v30, %v1415_v42  ;;  %v1392_v45 = vrot.slane %v1391_v56, 1  ;;  %vm3300_vm8 = vmmov %vm3195_vm0 }
 0x15e   : > { %v1788_v5 = vpop.eup %1787  ;;  %v1316_v41 = vadd.f32 %v1786_v35, %v1315_v50  ;;  %v3070_v60 = vadd.f32 %v1399_v9, %v1398_v34  ;;  %1795 = vpow2.f32 %v1313_v26  ;;  %v3072_v14 = vadd.f32 %v1406_v29, %v1405_v28  ;;  %vm3301_vm7 = vmmov %vm3195_vm0 }
 0x15f   : > { %v1211_v13 = vadd.f32 %v1210_v21, %v1209_v33  ;;  %v1790_v1 = vpop.eup %1789  ;;  %v1411_v16 = vrot.slane %v1410_v47, 2  ;;  %v1418_v27 = vrot.slane %v1417_v2, 2  ;;  %v1386_v38 = vadd.f32 %v1385_v8, %v3028_v18 }
 0x160   : > { %v1317_v43 = vadd.f32 %v1788_v5, %v1316_v41  ;;  %v1792_v12 = vpop.eup %1791  ;;  %v1393_v44 = vadd.f32 %v1392_v45, %v1391_v56  ;;  %v1422_v19 = vmax.f32 %v3033_v20, %v3070_v60  ;;  %v1423_v32 = vmax.f32 %v3048_v63, %v3072_v14 }
 0x161   : > { %v1213_v15 = vadd.f32 %v1212_v0, %v1211_v13  ;;  %v1412_v36 = vadd.f32 %v1411_v16, %v1410_v47  ;;  %v1419_v6 = vadd.f32 %v1418_v27, %v1417_v2 }
 0x162   : > { %v1318_v17 = vadd.f32 %v1790_v1, %v1317_v43  ;;  %v1794_v31 = vpop.eup %1793  ;;  %v1426_v56 = vmax.f32 %v1422_v19, %v1423_v32 }
 0x163   : > { %v1215_v61 = vadd.f32 %v1214_v3, %v1213_v15  ;;  %v1413_v4 = vrot.slane %v1412_v36, 1  ;;  %v1420_v46 = vrot.slane %v1419_v6, 1 }
 0x164   : > { %v1319_v26 = vadd.f32 %v1792_v12, %v1318_v17  ;;  %v1796_v34 = vpop.eup %1795 }
 0x165   : > { %v1216_v10 = vadd.f32 %v1822_v37, %v1215_v61  ;;  %v1414_v48 = vadd.f32 %v1413_v4, %v1412_v36  ;;  %v1421_v39 = vadd.f32 %v1420_v46, %v1419_v6 }
 0x166   : > { %v1320_v62 = vadd.f32 %v1794_v31, %v1319_v26 }
 0x167   : > { %1595 = vst [vmem:[%s2545_s17 + $0x14] sm:$0xf] %v1216_v10  ;;  %v1424_v57 = vmax.f32 %v1386_v38, %v1414_v48  ;;  %v1425_v18 = vmax.f32 %v1393_v44, %v1421_v39 }
 0x168   : > { %v1321_v53 = vadd.f32 %v1796_v34, %v1320_v62 }
 0x169   : > { %v1427_v51 = vmax.f32 %v1424_v57, %v1425_v18 }
 0x16a   : > { %1797 = vrcp.f32 %v1321_v53 }
 0x16b   : > { %v1428_v22 = vmax.f32 %v1426_v56, %v1427_v51 }
 0x16d   : > { %v1429_v42 = vsub.f32 %v3033_v20, %v1428_v22  ;;  %v1430_v21 = vsub.f32 %v3048_v63, %v1428_v22  ;;  %v1431_v50 = vsub.f32 %v1386_v38, %v1428_v22  ;;  %v1432_v3 = vsub.f32 %v1393_v44, %v1428_v22 }
 0x16e   : > { %v1433_v13 = vsub.f32 %v3070_v60, %v1428_v22  ;;  %v1434_v16 = vsub.f32 %v3072_v14, %v1428_v22  ;;  %v1435_v36 = vsub.f32 %v1414_v48, %v1428_v22  ;;  %v1436_v44 = vsub.f32 %v1421_v39, %v1428_v22 }
 0x16f   : > { %v1437_v8 = vmul.f32 1.442695, %v1429_v42  ;;  %v1441_v41 = vmul.f32 1.442695, %v1431_v50  ;;  %v1443_v27 = vmul.f32 1.442695, %v1432_v3 }
 0x170   : > { %v1798_v25 = vpop.eup %1797  ;;  %v1445_v6 = vmul.f32 1.442695, %v1433_v13  ;;  %v1447_v14 = vmul.f32 1.442695, %v1434_v16  ;;  %v1449_v19 = vmul.f32 1.442695, %v1435_v36 }
 0x171   : > { %v1323_v9 = vmul.f32 %v1798_v25, %v3050_v11  ;;  %v1324_v28 = vmul.f32 %v1798_v25, %v3055_v40  ;;  %v1325_v23 = vmul.f32 %v1798_v25, %v1786_v35  ;;  %v1326_v30 = vmul.f32 %v1798_v25, %v1788_v5 }
 0x172   : > { %v1327_v33 = vmul.f32 %v1798_v25, %v1790_v1  ;;  %v1328_v0 = vmul.f32 %v1798_v25, %v1792_v12  ;;  %v1329_v63 = vmul.f32 %v1798_v25, %v1794_v31  ;;  %v1439_v11 = vmul.f32 1.442695, %v1430_v21 }
 0x173   : > { %v1331_v29 = vmul.f32 %v1323_v9, %v2284_v49  ;;  %v1332_v47 = vmul.f32 %v1324_v28, %v2290_v52  ;;  %v1333_v20 = vmul.f32 %v1325_v23, %v2296_v54  ;;  %v1334_v2 = vmul.f32 %v1326_v30, %v2307_v24 }
 0x174   : > { %v1335_v40 = vmul.f32 %v1327_v33, %v2310_v55  ;;  %v1330_v15 = vmul.f32 %v1798_v25, %v1796_v34  ;;  %v1336_v43 = vmul.f32 %v1328_v0, %v2315_v58  ;;  %1799 = vpow2.f32 %v1437_v8  ;;  %v1823_v25 = vld [vmem:[%s2029_s25 + $0x18] sm:$0xf] }
 0x175   : > { %v1339_v35 = vsel %vm3287_vm9, %v1331_v29, 0.0  ;;  %v1340_v5 = vsel %vm3288_vm10, %v1332_v47, 0.0  ;;  %v1342_v45 = vsel %vm3289_vm11, %v1333_v20, 0.0  ;;  %v1344_v12 = vsel %vm3290_vm12, %v1334_v2, 0.0 }
 0x176   : > { %v1341_v1 = vadd.f32 %v1340_v5, %v1339_v35  ;;  %1801 = vpow2.f32 %v1439_v11  ;;  %v1337_v61 = vmul.f32 %v1329_v63, %v2318_v59  ;;  %v1346_v17 = vsel %vm3291_vm13, %v1335_v40, 0.0 }
 0x177   : > { %1803 = vpow2.f32 %v1441_v41  ;;  %v1338_v31 = vmul.f32 %v1330_v15, %v2334_v7  ;;  %v1348_v4 = vsel %vm3292_vm14, %v1336_v43, 0.0  ;;  %v1451_v34 = vmul.f32 1.442695, %v1436_v44 }
 0x178   : > { %v1343_v60 = vadd.f32 %v1342_v45, %v1341_v1  ;;  %1805 = vpow2.f32 %v1443_v27  ;;  %v1350_v37 = vsel %vm3293_vm15, %v1337_v61, 0.0 }
 0x179   : > { %1807 = vpow2.f32 %v1445_v6  ;;  %v1352_v39 = vsel %vm3294_vm1, %v1338_v31, 0.0 }
 0x17a   : > { %v1345_v38 = vadd.f32 %v1344_v12, %v1343_v60  ;;  %v1800_v32 = vpop.eup %1799  ;;  %1809 = vpow2.f32 %v1447_v14 }
 0x17b   : > { %1811 = vpow2.f32 %v1449_v19 }
 0x17c   : > { %v1347_v46 = vadd.f32 %v1346_v17, %v1345_v38  ;;  %v1802_v10 = vpop.eup %1801  ;;  %1813 = vpow2.f32 %v1451_v34 }
 0x17d   : > { %v1804_v48 = vpop.eup %1803  ;;  %v1453_v62 = vadd.f32 %v1802_v10, %v1800_v32 }
 0x17e   : > { %v1349_v26 = vadd.f32 %v1348_v4, %v1347_v46  ;;  %v1806_v57 = vpop.eup %1805 }
 0x17f   : > { %v1454_v56 = vadd.f32 %v1804_v48, %v1453_v62  ;;  %v1808_v53 = vpop.eup %1807 }
 0x180   : > { %v1351_v18 = vadd.f32 %v1350_v37, %v1349_v26  ;;  %v1810_v42 = vpop.eup %1809 }
 0x181   : > { %v1455_v22 = vadd.f32 %v1806_v57, %v1454_v56  ;;  %v1812_v9 = vpop.eup %1811 }
 0x182   : > { %v1353_v51 = vadd.f32 %v1352_v39, %v1351_v18  ;;  %v1814_v23 = vpop.eup %1813 }
 0x183   : > { %v1456_v50 = vadd.f32 %v1808_v53, %v1455_v22 }
 0x184   : > { %v1354_v21 = vadd.f32 %v1823_v25, %v1353_v51 }
 0x185   : > { %v1457_v28 = vadd.f32 %v1810_v42, %v1456_v50 }
 0x186   : > { %1596 = vst [vmem:[%s2545_s17 + $0x18] sm:$0xf] %v1354_v21 }
 0x187   : > { %v1458_v30 = vadd.f32 %v1812_v9, %v1457_v28 }
 0x189   : > { %v1459_v33 = vadd.f32 %v1814_v23, %v1458_v30 }
 0x18b   : > { %1815 = vrcp.f32 %v1459_v33 }
 0x191   : > { %v1816_v0 = vpop.eup %1815 }
 0x192   : > { %v1461_v3 = vmul.f32 %v1816_v0, %v1800_v32  ;;  %v1462_v8 = vmul.f32 %v1816_v0, %v1802_v10  ;;  %v1463_v29 = vmul.f32 %v1816_v0, %v1804_v48  ;;  %v1464_v47 = vmul.f32 %v1816_v0, %v1806_v57 }
 0x193   : > { %v1465_v20 = vmul.f32 %v1816_v0, %v1808_v53  ;;  %v1466_v2 = vmul.f32 %v1816_v0, %v1810_v42  ;;  %v1467_v40 = vmul.f32 %v1816_v0, %v1812_v9  ;;  %v1468_v27 = vmul.f32 %v1816_v0, %v1814_v23 }
 0x194   : > { %v1469_v63 = vmul.f32 %v1461_v3, %v2284_v49  ;;  %v1470_v13 = vmul.f32 %v1462_v8, %v2290_v52  ;;  %v1471_v11 = vmul.f32 %v1463_v29, %v2296_v54  ;;  %v1472_v41 = vmul.f32 %v1464_v47, %v2307_v24 }
 0x195   : > { %v1473_v35 = vmul.f32 %v1465_v20, %v2310_v55  ;;  %v1474_v49 = vmul.f32 %v1466_v2, %v2315_v58  ;;  %v1475_v54 = vmul.f32 %v1467_v40, %v2318_v59  ;;  %v1476_v43 = vmul.f32 %v1468_v27, %v2334_v7  ;;  %v1824_v7 = vld [vmem:[%s2029_s25 + $0x1c] sm:$0xf] }
 0x196   : > { %v1477_v5 = vsel %vm3295_vm2, %v1469_v63, 0.0  ;;  %v1478_v45 = vsel %vm3296_vm3, %v1470_v13, 0.0  ;;  %v1480_v1 = vsel %vm3297_vm4, %v1471_v11, 0.0  ;;  %v1482_v52 = vsel %vm3298_vm5, %v1472_v41, 0.0 }
 0x197   : > { %v1479_v16 = vadd.f32 %v1478_v45, %v1477_v5  ;;  %v1484_v24 = vsel %vm3299_vm6, %v1473_v35, 0.0  ;;  %v1486_v12 = vsel %vm3300_vm8, %v1474_v49, 0.0  ;;  %v1488_v36 = vsel %vm3195_vm0, %v1475_v54, 0.0 }
 0x198   : > { %v1490_v59 = vsel %vm3301_vm7, %v1476_v43, 0.0 }
 0x199   : > { %v1481_v15 = vadd.f32 %v1480_v1, %v1479_v16 }
 0x19b   : > { %v1483_v55 = vadd.f32 %v1482_v52, %v1481_v15 }
 0x19d   : > { %v1485_v60 = vadd.f32 %v1484_v24, %v1483_v55 }
 0x19f   : > { %v1487_v58 = vadd.f32 %v1486_v12, %v1485_v60 }
 0x1a1   : > { %v1489_v6 = vadd.f32 %v1488_v36, %v1487_v58 }
 0x1a3   : > { %v1491_v61 = vadd.f32 %v1490_v59, %v1489_v6 }
 0x1a5   : > { %v1492_v17 = vadd.f32 %v1824_v7, %v1491_v61 }
 0x1a7   : > { %1597 = vst [vmem:[%s2545_s17 + $0x1c] sm:$0xf] %v1492_v17 }
 0x1a8   : > { %1882 = shalt.err (!%p1879_p4)
}
 0x1a9   : > { %s1927_s20 = smov 64   ;;  %s1928_s21 = smov 256  }
 0x1aa   : > { %s1929_s22 = smov 4  }
 0x1ab   : > { %1604 = dma.vmem_to_hbm [thread:$0]  (%p1989_p10), %s1508_s30, 512, %s1510_s10, %s1496_s2, %s1927_s20, %s1928_s21, %s1929_s22  }
 0x1ac PF: > { %p1615_p5 = scmp.ge.s32.totalorder %s1921_s9, 2  ;;  %s1524_s23 = sand.u32 1, %s1909_s6  }
 0x1ad   : > { %s1525_s24 = scalar_lea.sflag [#allocation4], %s1524_s23 }
 0x1ae   : > { %p1611_p7 = pnand %p1615_p5, %p1993_p11 }
 0x1b0   : > { %p1612_p8 = pneg %p1611_p7 }
 0x1b2   : > { %1904 = dma.done.wait (%p1612_p8), %s1525_s24, 512  }
 0x1b3   : > { %1906 = vsyncadd (%p1612_p8), %s1525_s24, 4294966784  ;;  %p14_p9 = scmp.ge.s32.totalorder %s1965_s12, 6   ;;  %s3302_s6 = smov %s1913_s7 }
 0x1b4   : > { %s3303_s7 = smov %s1917_s8  ;;  %s3304_s8 = smov %s1977_s15 }
 0x1b5   : > { %s3305_s9 = smov %s1965_s12  ;;  %16 = sbr.rel (!%p14_p9) target bundleno = 5 (0x5), region = 76 }
 0x1ba   :  { %1531 = vsyncpa [#allocation3], 1 }
 0x1bb   :  { %1533 = vsyncpa [#allocation3 + $0x1], 1 }
 0x1bc   :  { %1534 = vsyncpa [#allocation4], 1 }
 0x1bd   :  { %1536 = vsyncpa [#allocation4 + $0x1], 1 }

</bundles_post_ra>
